<compile_context>
chip_gen: v5e
topology: v5e:2x2
jax: 0.10.0
libtpu: 0.0.40
codegen_flags: <defaults>
</compile_context>

<pallas_src>
import jax
import jax.numpy as jnp
from jax.experimental import pallas as pl
from jax.experimental.pallas import tpu as pltpu


def dwconv3x3_kernel(x_ref, w_ref, b_ref, o_ref, xs_ref):
    # x_ref : (1, H, W, Ct)    unpadded input block (one batch elem, one C tile)
    # w_ref : (3, 3, Ct)       depthwise taps, tap-major / channel-last
    # b_ref : (1, 1, Ct)       bias
    # o_ref : (1, H, W, Ct)    output block
    # xs_ref: (3, H+2, W, Ct)  VMEM scratch: for kw = 0,1,2 (dw = -1,0,+1) a
    #                          W-shifted copy of x with zero halo rows on top
    #                          and bottom and zeroed boundary column.
    H = o_ref.shape[1]
    W = o_ref.shape[2]
    C = o_ref.shape[3]

    x = x_ref[0, :, :, :]                      # (H, W, Ct), input dtype

    zrow = jnp.zeros((3, 1, W, C), x.dtype)
    zcol = jnp.zeros((1, H, 1, C), x.dtype)

    # Zero halo rows (h = -1 and h = H) for all three shifted copies.
    xs_ref[:, 0:1, :, :] = zrow
    xs_ref[:, H + 1:H + 2, :, :] = zrow

    # kw=1 (dw=0): centered copy.
    xs_ref[1:2, 1:H + 1, :, :] = x[None]
    # kw=0 (dw=-1): tap reads x[h, w-1]  -> shift right, zero first column.
    xs_ref[0:1, 1:H + 1, 1:W, :] = x[None, :, 0:W - 1, :]
    xs_ref[0:1, 1:H + 1, 0:1, :] = zcol
    # kw=2 (dw=+1): tap reads x[h, w+1]  -> shift left, zero last column.
    xs_ref[2:3, 1:H + 1, 0:W - 1, :] = x[None, :, 1:W, :]
    xs_ref[2:3, 1:H + 1, W - 1:W, :] = zcol

    # 9 aligned multiply-accumulates (VPU elementwise, C broadcasts on lanes).
    # H offsets are plain address offsets into the scratch; no sublane shifts.
    # Bias is folded into the accumulator start.  Cross-correlation, matching
    # nn.Conv2d.
    acc = jnp.broadcast_to(b_ref[0, 0, :].astype(jnp.float32), (H, W, C))
    for kh in range(3):
        for kw in range(3):
            tap = xs_ref[kw, kh:kh + H, :, :].astype(jnp.float32)
            acc = acc + tap * w_ref[kh, kw, :].astype(jnp.float32)

    o_ref[...] = acc[None].astype(o_ref.dtype)


def dwconv_forward(x, weight_taps, bias, H, W):
    """x: (B, N, C) with N == H*W; weight_taps: (3, 3, C); bias: (C,)."""
    B, N, C = x.shape
    assert N == H * W

    # Lane-dense channel tile (keep C a multiple of 128 in real configs).
    TILE_C = 128 if (C % 128 == 0) else C
    num_ct = C // TILE_C

    x_img = x.reshape(B, H, W, C)              # NHWC view (free reshape)
    bias_r = bias.reshape(1, 1, C)

    out = pl.pallas_call(
        dwconv3x3_kernel,
        out_shape=jax.ShapeDtypeStruct((B, H, W, C), x.dtype),
        grid_spec=pltpu.PrefetchScalarGridSpec(
            num_scalar_prefetch=0,
            grid=(B, num_ct),
            in_specs=[
                pl.BlockSpec((1, H, W, TILE_C), lambda b, c: (b, 0, 0, c)),
                pl.BlockSpec((3, 3, TILE_C), lambda b, c: (0, 0, c)),
                pl.BlockSpec((1, 1, TILE_C), lambda b, c: (0, 0, c)),
            ],
            out_specs=pl.BlockSpec((1, H, W, TILE_C), lambda b, c: (b, 0, 0, c)),
            scratch_shapes=[pltpu.VMEM((3, H + 2, W, TILE_C), x.dtype)],
        ),
        compiler_params=pltpu.CompilerParams(
            dimension_semantics=("parallel", "parallel")),
    )(x_img, weight_taps, bias_r)

    return out.reshape(B, N, C)                # back to (B, N, C)


def torch_weight_to_taps(w_torch):
    """PyTorch depthwise weight (C, 1, 3, 3) -> tap-major (3, 3, C)."""
    return jnp.transpose(w_torch[:, 0, :, :], (1, 2, 0))


if __name__ == "__main__":
    key = jax.random.PRNGKey(0)
    # Small but lane-dense test shape (C multiple of 128 keeps output stores
    # unmasked, as in the production dim=768 config).
    B, H, W, C = 2, 16, 16, 128
    N = H * W

    kx, kw, kb = jax.random.split(key, 3)
    x = jax.random.normal(kx, (B, N, C), dtype=jnp.float32)
    w_torch = jax.random.normal(kw, (C, 1, 3, 3), dtype=jnp.float32) * 0.1
    bias = jax.random.normal(kb, (C,), dtype=jnp.float32) * 0.1
    w_taps = torch_weight_to_taps(w_torch)     # (3, 3, C)

    out = dwconv_forward(x, w_taps, bias, H, W)
    out = jax.block_until_ready(out)

    # Pure-JAX reference (same semantics as nn.Conv2d(groups=C, pad=1, bias)).
    x_nchw = x.reshape(B, H, W, C).transpose(0, 3, 1, 2)
    ref = jax.lax.conv_general_dilated(
        x_nchw, w_torch, window_strides=(1, 1), padding=((1, 1), (1, 1)),
        feature_group_count=C, dimension_numbers=("NCHW", "OIHW", "NCHW"),
    ) + bias[None, :, None, None]
    ref = ref.reshape(B, C, N).transpose(0, 2, 1)

    assert out.shape == (B, N, C)
    assert jnp.allclose(out, ref, atol=1e-5, rtol=1e-5)
    print("KERNEL_OK")
</pallas_src>

<mosaic_0001>
module attributes {stable_mosaic.version = 11 : i64} {
  func.func @dwconv3x3_kernel(%arg0: i32, %arg1: i32, %arg2: memref<1x16x16x128xf32, #tpu.memory_space<vmem>>, %arg3: memref<3x3x128xf32, #tpu.memory_space<vmem>>, %arg4: memref<1x1x128xf32, #tpu.memory_space<vmem>>, %arg5: memref<1x16x16x128xf32, #tpu.memory_space<vmem>>, %arg6: memref<3x18x16x128xf32, #tpu.memory_space<vmem>>) attributes {dimension_semantics = [#tpu.dimension_semantics<parallel>, #tpu.dimension_semantics<parallel>], iteration_bounds = array<i64: 2, 1>, scalar_prefetch = 0 : i64, scratch_operands = 1 : i64, tpu.core_type = #tpu.core_type<tc>, window_params = [{transform_indices = @transform_0, window_bounds = array<i64: 1, 16, 16, 128>}, {transform_indices = @transform_1, window_bounds = array<i64: 3, 3, 128>}, {transform_indices = @transform_2, window_bounds = array<i64: 1, 1, 128>}, {transform_indices = @transform_3, window_bounds = array<i64: 1, 16, 16, 128>}]} {
    %c0 = arith.constant 0 : index
    %c0_0 = arith.constant 0 : index
    %c0_1 = arith.constant 0 : index
    %c0_2 = arith.constant 0 : index
    %0 = vector.load %arg2[%c0, %c0_0, %c0_1, %c0_2] : memref<1x16x16x128xf32, #tpu.memory_space<vmem>>, vector<1x16x16x128xf32>
    %1 = vector.shape_cast %0 : vector<1x16x16x128xf32> to vector<16x16x128xf32>
    %cst = arith.constant 0.000000e+00 : f32
    %2 = vector.broadcast %cst : f32 to vector<3x1x16x128xf32>
    %cst_3 = arith.constant 0.000000e+00 : f32
    %3 = vector.broadcast %cst_3 : f32 to vector<1x16x1x128xf32>
    %c0_4 = arith.constant 0 : index
    %c0_5 = arith.constant 0 : index
    %c0_6 = arith.constant 0 : index
    %c0_7 = arith.constant 0 : index
    %4 = vector.load %arg6[%c0_4, %c0_5, %c0_6, %c0_7] : memref<3x18x16x128xf32, #tpu.memory_space<vmem>>, vector<3x1x16x128xf32>
    tpu.vector_store %arg6[%c0_4, %c0_5, %c0_6, %c0_7], %2 {strides = array<i32>} : memref<3x18x16x128xf32, #tpu.memory_space<vmem>>, vector<3x1x16x128xf32>,
    %c0_8 = arith.constant 0 : index
    %c17 = arith.constant 17 : index
    %c0_9 = arith.constant 0 : index
    %c0_10 = arith.constant 0 : index
    %5 = vector.load %arg6[%c0_8, %c17, %c0_9, %c0_10] : memref<3x18x16x128xf32, #tpu.memory_space<vmem>>, vector<3x1x16x128xf32>
    tpu.vector_store %arg6[%c0_8, %c17, %c0_9, %c0_10], %2 {strides = array<i32>} : memref<3x18x16x128xf32, #tpu.memory_space<vmem>>, vector<3x1x16x128xf32>,
    %6 = vector.shape_cast %1 : vector<16x16x128xf32> to vector<1x16x16x128xf32>
    %c1 = arith.constant 1 : index
    %c1_11 = arith.constant 1 : index
    %c0_12 = arith.constant 0 : index
    %c0_13 = arith.constant 0 : index
    %7 = vector.load %arg6[%c1, %c1_11, %c0_12, %c0_13] : memref<3x18x16x128xf32, #tpu.memory_space<vmem>>, vector<1x16x16x128xf32>
    tpu.vector_store %arg6[%c1, %c1_11, %c0_12, %c0_13], %6 {strides = array<i32>} : memref<3x18x16x128xf32, #tpu.memory_space<vmem>>, vector<1x16x16x128xf32>,
    %8 = vector.extract_strided_slice %1 {offsets = [0, 0, 0], sizes = [16, 15, 128], strides = [1, 1, 1]} : vector<16x16x128xf32> to vector<16x15x128xf32>
    %9 = vector.shape_cast %8 : vector<16x15x128xf32> to vector<1x16x15x128xf32>
    %c0_14 = arith.constant 0 : index
    %c1_15 = arith.constant 1 : index
    %c1_16 = arith.constant 1 : index
    %c0_17 = arith.constant 0 : index
    %10 = vector.load %arg6[%c0_14, %c1_15, %c1_16, %c0_17] : memref<3x18x16x128xf32, #tpu.memory_space<vmem>>, vector<1x16x15x128xf32>
    tpu.vector_store %arg6[%c0_14, %c1_15, %c1_16, %c0_17], %9 {strides = array<i32>} : memref<3x18x16x128xf32, #tpu.memory_space<vmem>>, vector<1x16x15x128xf32>,
    %c0_18 = arith.constant 0 : index
    %c1_19 = arith.constant 1 : index
    %c0_20 = arith.constant 0 : index
    %c0_21 = arith.constant 0 : index
    %11 = vector.load %arg6[%c0_18, %c1_19, %c0_20, %c0_21] : memref<3x18x16x128xf32, #tpu.memory_space<vmem>>, vector<1x16x1x128xf32>
    tpu.vector_store %arg6[%c0_18, %c1_19, %c0_20, %c0_21], %3 {strides = array<i32>} : memref<3x18x16x128xf32, #tpu.memory_space<vmem>>, vector<1x16x1x128xf32>,
    %12 = vector.extract_strided_slice %1 {offsets = [0, 1, 0], sizes = [16, 15, 128], strides = [1, 1, 1]} : vector<16x16x128xf32> to vector<16x15x128xf32>
    %13 = vector.shape_cast %12 : vector<16x15x128xf32> to vector<1x16x15x128xf32>
    %c2 = arith.constant 2 : index
    %c1_22 = arith.constant 1 : index
    %c0_23 = arith.constant 0 : index
    %c0_24 = arith.constant 0 : index
    %14 = vector.load %arg6[%c2, %c1_22, %c0_23, %c0_24] : memref<3x18x16x128xf32, #tpu.memory_space<vmem>>, vector<1x16x15x128xf32>
    tpu.vector_store %arg6[%c2, %c1_22, %c0_23, %c0_24], %13 {strides = array<i32>} : memref<3x18x16x128xf32, #tpu.memory_space<vmem>>, vector<1x16x15x128xf32>,
    %c2_25 = arith.constant 2 : index
    %c1_26 = arith.constant 1 : index
    %c15 = arith.constant 15 : index
    %c0_27 = arith.constant 0 : index
    %15 = vector.load %arg6[%c2_25, %c1_26, %c15, %c0_27] : memref<3x18x16x128xf32, #tpu.memory_space<vmem>>, vector<1x16x1x128xf32>
    tpu.vector_store %arg6[%c2_25, %c1_26, %c15, %c0_27], %3 {strides = array<i32>} : memref<3x18x16x128xf32, #tpu.memory_space<vmem>>, vector<1x16x1x128xf32>,
    %c0_28 = arith.constant 0 : index
    %c0_29 = arith.constant 0 : index
    %c0_30 = arith.constant 0 : index
    %16 = vector.load %arg4[%c0_28, %c0_29, %c0_30] : memref<1x1x128xf32, #tpu.memory_space<vmem>>, vector<1x1x128xf32>
    %17 = vector.shape_cast %16 : vector<1x1x128xf32> to vector<128xf32>
    %18 = vector.shape_cast %17 : vector<128xf32> to vector<1x1x128xf32>
    %19 = vector.broadcast %18 : vector<1x1x128xf32> to vector<16x16x128xf32>
    %c0_31 = arith.constant 0 : index
    %c0_32 = arith.constant 0 : index
    %c0_33 = arith.constant 0 : index
    %c0_34 = arith.constant 0 : index
    %20 = vector.load %arg6[%c0_31, %c0_32, %c0_33, %c0_34] : memref<3x18x16x128xf32, #tpu.memory_space<vmem>>, vector<1x16x16x128xf32>
    %21 = vector.shape_cast %20 : vector<1x16x16x128xf32> to vector<16x16x128xf32>
    %c0_35 = arith.constant 0 : index
    %c0_36 = arith.constant 0 : index
    %c0_37 = arith.constant 0 : index
    %22 = vector.load %arg3[%c0_35, %c0_36, %c0_37] : memref<3x3x128xf32, #tpu.memory_space<vmem>>, vector<1x1x128xf32>
    %23 = vector.shape_cast %22 : vector<1x1x128xf32> to vector<128xf32>
    %24 = vector.shape_cast %23 : vector<128xf32> to vector<1x1x128xf32>
    %25 = vector.broadcast %24 : vector<1x1x128xf32> to vector<16x16x128xf32>
    %26 = arith.mulf %21, %25 : vector<16x16x128xf32>
    %27 = arith.addf %19, %26 : vector<16x16x128xf32>
    %c1_38 = arith.constant 1 : index
    %c0_39 = arith.constant 0 : index
    %c0_40 = arith.constant 0 : index
    %c0_41 = arith.constant 0 : index
    %28 = vector.load %arg6[%c1_38, %c0_39, %c0_40, %c0_41] : memref<3x18x16x128xf32, #tpu.memory_space<vmem>>, vector<1x16x16x128xf32>
    %29 = vector.shape_cast %28 : vector<1x16x16x128xf32> to vector<16x16x128xf32>
    %c0_42 = arith.constant 0 : index
    %c1_43 = arith.constant 1 : index
    %c0_44 = arith.constant 0 : index
    %30 = vector.load %arg3[%c0_42, %c1_43, %c0_44] : memref<3x3x128xf32, #tpu.memory_space<vmem>>, vector<1x1x128xf32>
    %31 = vector.shape_cast %30 : vector<1x1x128xf32> to vector<128xf32>
    %32 = vector.shape_cast %31 : vector<128xf32> to vector<1x1x128xf32>
    %33 = vector.broadcast %32 : vector<1x1x128xf32> to vector<16x16x128xf32>
    %34 = arith.mulf %29, %33 : vector<16x16x128xf32>
    %35 = arith.addf %27, %34 : vector<16x16x128xf32>
    %c2_45 = arith.constant 2 : index
    %c0_46 = arith.constant 0 : index
    %c0_47 = arith.constant 0 : index
    %c0_48 = arith.constant 0 : index
    %36 = vector.load %arg6[%c2_45, %c0_46, %c0_47, %c0_48] : memref<3x18x16x128xf32, #tpu.memory_space<vmem>>, vector<1x16x16x128xf32>
    %37 = vector.shape_cast %36 : vector<1x16x16x128xf32> to vector<16x16x128xf32>
    %c0_49 = arith.constant 0 : index
    %c2_50 = arith.constant 2 : index
    %c0_51 = arith.constant 0 : index
    %38 = vector.load %arg3[%c0_49, %c2_50, %c0_51] : memref<3x3x128xf32, #tpu.memory_space<vmem>>, vector<1x1x128xf32>
    %39 = vector.shape_cast %38 : vector<1x1x128xf32> to vector<128xf32>
    %40 = vector.shape_cast %39 : vector<128xf32> to vector<1x1x128xf32>
    %41 = vector.broadcast %40 : vector<1x1x128xf32> to vector<16x16x128xf32>
    %42 = arith.mulf %37, %41 : vector<16x16x128xf32>
    %43 = arith.addf %35, %42 : vector<16x16x128xf32>
    %c0_52 = arith.constant 0 : index
    %c1_53 = arith.constant 1 : index
    %c0_54 = arith.constant 0 : index
    %c0_55 = arith.constant 0 : index
    %44 = vector.load %arg6[%c0_52, %c1_53, %c0_54, %c0_55] : memref<3x18x16x128xf32, #tpu.memory_space<vmem>>, vector<1x16x16x128xf32>
    %45 = vector.shape_cast %44 : vector<1x16x16x128xf32> to vector<16x16x128xf32>
    %c1_56 = arith.constant 1 : index
    %c0_57 = arith.constant 0 : index
    %c0_58 = arith.constant 0 : index
    %46 = vector.load %arg3[%c1_56, %c0_57, %c0_58] : memref<3x3x128xf32, #tpu.memory_space<vmem>>, vector<1x1x128xf32>
    %47 = vector.shape_cast %46 : vector<1x1x128xf32> to vector<128xf32>
    %48 = vector.shape_cast %47 : vector<128xf32> to vector<1x1x128xf32>
    %49 = vector.broadcast %48 : vector<1x1x128xf32> to vector<16x16x128xf32>
    %50 = arith.mulf %45, %49 : vector<16x16x128xf32>
    %51 = arith.addf %43, %50 : vector<16x16x128xf32>
    %c1_59 = arith.constant 1 : index
    %c1_60 = arith.constant 1 : index
    %c0_61 = arith.constant 0 : index
    %c0_62 = arith.constant 0 : index
    %52 = vector.load %arg6[%c1_59, %c1_60, %c0_61, %c0_62] : memref<3x18x16x128xf32, #tpu.memory_space<vmem>>, vector<1x16x16x128xf32>
    %53 = vector.shape_cast %52 : vector<1x16x16x128xf32> to vector<16x16x128xf32>
    %c1_63 = arith.constant 1 : index
    %c1_64 = arith.constant 1 : index
    %c0_65 = arith.constant 0 : index
    %54 = vector.load %arg3[%c1_63, %c1_64, %c0_65] : memref<3x3x128xf32, #tpu.memory_space<vmem>>, vector<1x1x128xf32>
    %55 = vector.shape_cast %54 : vector<1x1x128xf32> to vector<128xf32>
    %56 = vector.shape_cast %55 : vector<128xf32> to vector<1x1x128xf32>
    %57 = vector.broadcast %56 : vector<1x1x128xf32> to vector<16x16x128xf32>
    %58 = arith.mulf %53, %57 : vector<16x16x128xf32>
    %59 = arith.addf %51, %58 : vector<16x16x128xf32>
    %c2_66 = arith.constant 2 : index
    %c1_67 = arith.constant 1 : index
    %c0_68 = arith.constant 0 : index
    %c0_69 = arith.constant 0 : index
    %60 = vector.load %arg6[%c2_66, %c1_67, %c0_68, %c0_69] : memref<3x18x16x128xf32, #tpu.memory_space<vmem>>, vector<1x16x16x128xf32>
    %61 = vector.shape_cast %60 : vector<1x16x16x128xf32> to vector<16x16x128xf32>
    %c1_70 = arith.constant 1 : index
    %c2_71 = arith.constant 2 : index
    %c0_72 = arith.constant 0 : index
    %62 = vector.load %arg3[%c1_70, %c2_71, %c0_72] : memref<3x3x128xf32, #tpu.memory_space<vmem>>, vector<1x1x128xf32>
    %63 = vector.shape_cast %62 : vector<1x1x128xf32> to vector<128xf32>
    %64 = vector.shape_cast %63 : vector<128xf32> to vector<1x1x128xf32>
    %65 = vector.broadcast %64 : vector<1x1x128xf32> to vector<16x16x128xf32>
    %66 = arith.mulf %61, %65 : vector<16x16x128xf32>
    %67 = arith.addf %59, %66 : vector<16x16x128xf32>
    %c0_73 = arith.constant 0 : index
    %c2_74 = arith.constant 2 : index
    %c0_75 = arith.constant 0 : index
    %c0_76 = arith.constant 0 : index
    %68 = vector.load %arg6[%c0_73, %c2_74, %c0_75, %c0_76] : memref<3x18x16x128xf32, #tpu.memory_space<vmem>>, vector<1x16x16x128xf32>
    %69 = vector.shape_cast %68 : vector<1x16x16x128xf32> to vector<16x16x128xf32>
    %c2_77 = arith.constant 2 : index
    %c0_78 = arith.constant 0 : index
    %c0_79 = arith.constant 0 : index
    %70 = vector.load %arg3[%c2_77, %c0_78, %c0_79] : memref<3x3x128xf32, #tpu.memory_space<vmem>>, vector<1x1x128xf32>
    %71 = vector.shape_cast %70 : vector<1x1x128xf32> to vector<128xf32>
    %72 = vector.shape_cast %71 : vector<128xf32> to vector<1x1x128xf32>
    %73 = vector.broadcast %72 : vector<1x1x128xf32> to vector<16x16x128xf32>
    %74 = arith.mulf %69, %73 : vector<16x16x128xf32>
    %75 = arith.addf %67, %74 : vector<16x16x128xf32>
    %c1_80 = arith.constant 1 : index
    %c2_81 = arith.constant 2 : index
    %c0_82 = arith.constant 0 : index
    %c0_83 = arith.constant 0 : index
    %76 = vector.load %arg6[%c1_80, %c2_81, %c0_82, %c0_83] : memref<3x18x16x128xf32, #tpu.memory_space<vmem>>, vector<1x16x16x128xf32>
    %77 = vector.shape_cast %76 : vector<1x16x16x128xf32> to vector<16x16x128xf32>
    %c2_84 = arith.constant 2 : index
    %c1_85 = arith.constant 1 : index
    %c0_86 = arith.constant 0 : index
    %78 = vector.load %arg3[%c2_84, %c1_85, %c0_86] : memref<3x3x128xf32, #tpu.memory_space<vmem>>, vector<1x1x128xf32>
    %79 = vector.shape_cast %78 : vector<1x1x128xf32> to vector<128xf32>
    %80 = vector.shape_cast %79 : vector<128xf32> to vector<1x1x128xf32>
    %81 = vector.broadcast %80 : vector<1x1x128xf32> to vector<16x16x128xf32>
    %82 = arith.mulf %77, %81 : vector<16x16x128xf32>
    %83 = arith.addf %75, %82 : vector<16x16x128xf32>
    %c2_87 = arith.constant 2 : index
    %c2_88 = arith.constant 2 : index
    %c0_89 = arith.constant 0 : index
    %c0_90 = arith.constant 0 : index
    %84 = vector.load %arg6[%c2_87, %c2_88, %c0_89, %c0_90] : memref<3x18x16x128xf32, #tpu.memory_space<vmem>>, vector<1x16x16x128xf32>
    %85 = vector.shape_cast %84 : vector<1x16x16x128xf32> to vector<16x16x128xf32>
    %c2_91 = arith.constant 2 : index
    %c2_92 = arith.constant 2 : index
    %c0_93 = arith.constant 0 : index
    %86 = vector.load %arg3[%c2_91, %c2_92, %c0_93] : memref<3x3x128xf32, #tpu.memory_space<vmem>>, vector<1x1x128xf32>
    %87 = vector.shape_cast %86 : vector<1x1x128xf32> to vector<128xf32>
    %88 = vector.shape_cast %87 : vector<128xf32> to vector<1x1x128xf32>
    %89 = vector.broadcast %88 : vector<1x1x128xf32> to vector<16x16x128xf32>
    %90 = arith.mulf %85, %89 : vector<16x16x128xf32>
    %91 = arith.addf %83, %90 : vector<16x16x128xf32>
    %92 = vector.shape_cast %91 : vector<16x16x128xf32> to vector<1x16x16x128xf32>
    %c0_94 = arith.constant 0 : index
    %c0_95 = arith.constant 0 : index
    %c0_96 = arith.constant 0 : index
    %c0_97 = arith.constant 0 : index
    %93 = vector.load %arg5[%c0_94, %c0_95, %c0_96, %c0_97] : memref<1x16x16x128xf32, #tpu.memory_space<vmem>>, vector<1x16x16x128xf32>
    tpu.vector_store %arg5[%c0_94, %c0_95, %c0_96, %c0_97], %92 {strides = array<i32>} : memref<1x16x16x128xf32, #tpu.memory_space<vmem>>, vector<1x16x16x128xf32>,
    return
  }
  func.func @transform_0(%arg0: i32, %arg1: i32) -> (i32, i32, i32, i32) {
    %c0_i32 = arith.constant 0 : i32
    %c0_i32_0 = arith.constant 0 : i32
    %c0_i32_1 = arith.constant 0 : i32
    return %arg0, %c0_i32, %c0_i32_0, %arg1 : i32, i32, i32, i32
  }
  func.func @transform_1(%arg0: i32, %arg1: i32) -> (i32, i32, i32) {
    %c0_i32 = arith.constant 0 : i32
    %c0_i32_0 = arith.constant 0 : i32
    %c0_i32_1 = arith.constant 0 : i32
    return %c0_i32, %c0_i32_0, %arg1 : i32, i32, i32
  }
  func.func @transform_2(%arg0: i32, %arg1: i32) -> (i32, i32, i32) {
    %c0_i32 = arith.constant 0 : i32
    %c0_i32_0 = arith.constant 0 : i32
    %c0_i32_1 = arith.constant 0 : i32
    return %c0_i32, %c0_i32_0, %arg1 : i32, i32, i32
  }
  func.func @transform_3(%arg0: i32, %arg1: i32) -> (i32, i32, i32, i32) {
    %c0_i32 = arith.constant 0 : i32
    %c0_i32_0 = arith.constant 0 : i32
    %c0_i32_1 = arith.constant 0 : i32
    return %arg0, %c0_i32, %c0_i32_0, %arg1 : i32, i32, i32, i32
  }
}

</mosaic_0001>

<bundles_post_ra>
// kernel: tpu_custom_call.1
= control target key start
LH: loop header
LB: loop body
LE: loop exit
PB: predicated region body
PF: predicated region fallthrough
CT: control target
= control target key end

     0   :  { %s2533_s0 = inlined_call_operand.hbm [shape: f32[2,16,16,128], index: 0, kind: input, shape index: {}]   ;;  %s2534_s1 = inlined_call_operand.hbm [shape: f32[3,3,128], index: 1, kind: input, shape index: {}]   ;;  %s2535_s2 = inlined_call_operand.vmem [shape: f32[1,1,128], index: 2, kind: input, shape index: {}]   ;;  %s2536_s3 = inlined_call_operand.hbm [shape: f32[2,16,16,128], index: 3, kind: output, shape index: {}]  }
   0x1   :  { %2537 = sst [smem:[#allocation12_spill]] %s2534_s1 }
   0x2   :  { %8 = vsyncpa [#allocation4], 0 }
   0x3   :  { %10 = vsyncpa [#allocation4 + $0x1], 0 }
   0x4   :  { %11 = vsyncpa [#allocation7], 0 }
   0x5   :  { %12 = vsyncpa [#allocation5], 0 }
   0x6   :  { %14 = vsyncpa [#allocation5 + $0x1], 0  ;;  %s1770_s12 = smov 0   ;;  %s1772_s13 = smov 0  }
   0x7   :  { %s1774_s14 = smov 0   ;;  %s1776_s15 = smov 0  }
   0x8   :  { %s1778_s16 = smov 0   ;;  %s1780_s17 = smov 0  }
   0x9 LB: > { %s1473_s18 = sadd.s32 4294967295, %s1740_s17   ;;  %s1474_s19 = sadd.s32 4294967294, %s1740_s17   ;;  %s1740_s17 = sphi %s1780_s17, %s20_s17   ;;  %s1736_s16 = sphi %s1778_s16, %s2550_s16   ;;  %s1732_s15 = sphi %s1776_s15, %s2549_s15   ;;  %s1728_s14 = sphi %s1774_s14, %s2548_s14   ;;  %s1724_s13 = sphi %s1772_s13, %s2547_s13   ;;  %s1720_s12 = sphi %s1770_s12, %s2546_s12  }
   0xa   : > { %p54_p0 = scmp.ne.s32.totalorder %s1724_s13, %s1720_s12  ;;  %p1804_p1 = scmp.eq.s32.totalorder %s1473_s18, 0 }
   0xb   : > { %p1808_p2 = scmp.eq.s32.totalorder %s1473_s18, 1  ;;  %p138_p3 = scmp.eq.s32.totalorder %s1474_s19, 1 }
   0xc   : > { %p1814_p4 = por %p1804_p1, %p54_p0  ;;  %p1475_p5 = scmp.ge.s32.totalorder %s1740_s17, 1 }
   0xd   : > { %p1819_p6 = por %p138_p3, %p54_p0  ;;  %p145_p7 = scmp.lt.s32.totalorder %s1740_s17, 3 }
   0xe   : > { %s2542_s1 = sld [smem:[#allocation12_spill]]  ;;  %s1742_s28 = smov [#allocation6]  }
   0xf   : > { %p1827_p8 = pnand %p1475_p5, %p145_p7  ;;  %s160_s29 = sshll.u32 %s1742_s28, 4  ;;  %s161_s29 = int_to_ptr.vmem [resolvable:$true] %s160_s29 }
  0x10   : > { %p1478_p11 = scmp.ge.s32.totalorder %s1740_s17, 2  ;;  %s1743_s30 = smov 64  }
  0x11   : > { %p1501_p9 = pneg %p1827_p8  ;;  %s1744_s4 = smov 4  }
  0x12   : > { %s32_s5 = sadd.s32 1, %s1736_s16  ;;  %s41_s6 = sadd.s32 1, %s1728_s14 }
  0x13   : > { %p1502_p10 = pnand %p1501_p9, %p1804_p1  ;;  %p34_p12 = scmp.ge.s32.totalorder %s32_s5, 2 }
  0x14   : > { %s158_s26 = sshll.u32 %s2542_s1, 4  ;;  %p48_p13 = scmp.ne.s32.totalorder %s1728_s14, %s1724_s13  ;;  %s159_s26 = int_to_ptr.hbm [resolvable:$true] %s158_s26 }
  0x15   : > { %1504 = dma.hbm_to_vmem [thread:$0]  (!%p1502_p10), %s159_s26, 192, %s161_s29, [#allocation7], %s1743_s30, %s1743_s30, %s1744_s4  }
  0x16   : > { %p49_p0 = scmp.eq.s32.totalorder %s1740_s17, 0  ;;  %s2552_s5 = smov (%p34_p12, %s32_s5), 0 }
  0x17   : > { %p1849_p5 = por %p1808_p2, %p48_p13  ;;  %s36_s9 = ssub.s32 %s1736_s16, %s2552_s5 }
  0x18   : > { %p1843_p3 = por %p49_p0, %p48_p13  ;;  %p1514_p7 = scmp.lt.s32.totalorder %s1740_s17, 2 }
  0x19   : > { %p39_p9 = scmp.eq.s32.totalorder %s36_s9, 0  ;;  %s180_s10 = sand.u32 1, %s1728_s14  }
  0x1a   : > { %s1479_s11 = sshll.u32 %s180_s10, 8  ;;  %s1491_s19 = sshll.u32 %s1736_s16, 8 }
  0x1b   : > { %s1858_s18 = scalar_select %p39_p9, %s1728_s14, %s41_s6  }
  0x1c   : > { %s190_s26 = scalar_lea.hbm %s2533_s0, %s1491_s19  ;;  %s184_s28 = scalar_lea.vmem [#allocation3], %s1479_s11 }
  0x1d   : > { %s193_s29 = sshll.u32 %s184_s28, 4  ;;  %s191_s21 = sshll.u32 %s190_s26, 4  ;;  %s194_s29 = int_to_ptr.vmem [resolvable:$true] %s193_s29  ;;  %s192_s21 = int_to_ptr.hbm [resolvable:$true] %s191_s21 }
  0x1e   : > { %p1506_p2 = pnand %p1514_p7, %p1843_p3  ;;  %s181_s30 = scalar_lea.sflag [#allocation4], %s180_s10 }
  0x1f   : > { %s1745_s4 = smov 128   ;;  %s1746_s1 = smov 8  }
  0x20   : > { %1508 = dma.hbm_to_vmem [thread:$0]  (!%p1506_p2), %s192_s21, 4096, %s194_s29, %s181_s30, %s1745_s4, %s1745_s4, %s1746_s1  }
  0x21   : > { %205 = sbr.rel (%p1827_p8) target bundleno = 275 (0x113), region = 32  ;;  %s1869_s6 = sand.u32 (!%p1827_p8), 1, %s1724_s13  }
  0x22   : > { %s1483_s9 = sshll.u32 (!%p1827_p8), %s1869_s6, 8  ;;  %s208_s11 = scalar_lea.sflag (!%p1827_p8), [#allocation4], %s1869_s6 }
  0x23   : > { %s1875_s19 = scalar_lea.vmem (!%p1827_p8), [#allocation3], %s1483_s9 }
  0x26   : > { %1707 = dma.done.wait (%p1814_p4), %s208_s11, 4096  }
  0x27   : > { %1709 = vsyncadd (%p1814_p4), %s208_s11, 4294963200 }
  0x28   : > { %1711 = dma.done.wait (%p1804_p1), [#allocation7], 192  }
  0x29   : > { %1713 = vsyncadd (%p1804_p1), [#allocation7], 4294967104  ;;  %v1747_v0 = vmov 0.0   ;;  %v1886_v1 = vld [vmem:[%s1875_s19] sm:$0xff]  ;;  %v1890_v2 = vld [vmem:[%s1875_s19 + $0x8] sm:$0xff]  ;;  %s2174_s22 = scalar_lea.vmem [#allocation8], %s1483_s9 }
  0x2a   : > { %278 = vst [vmem:[#allocation2] sm:$0xff] %v1747_v0  ;;  %v1895_v3 = vld [vmem:[%s1875_s19 + $0x10] sm:$0xff]  ;;  %v1900_v4 = vld [vmem:[%s1875_s19 + $0x18] sm:$0xff]  ;;  %v1905_v5 = vld [vmem:[%s1875_s19 + $0x20] sm:$0xff]  ;;  %s1492_s10 = sshll.u32 %s1732_s15, 8  ;;  %s1361_s28 = sshll.u32 %s2174_s22, 4  ;;  %s1362_s28 = int_to_ptr.vmem [resolvable:$true] %s1361_s28 }
  0x2b   : > { %357 = vst [vmem:[#allocation2 + $0x10] sm:$0x1] %v1747_v0  ;;  %v1910_v6 = vld [vmem:[%s1875_s19 + $0x28] sm:$0xff]  ;;  %v1915_v7 = vld [vmem:[%s1875_s19 + $0x30] sm:$0xff]  ;;  %v1920_v8 = vld [vmem:[%s1875_s19 + $0x38] sm:$0xff]  ;;  %s1360_s26 = scalar_lea.hbm %s2536_s3, %s1492_s10  ;;  %s1348_s15 = scalar_lea.sflag [#allocation5], %s1869_s6 }
  0x2c   : > { %358 = vst [vmem:[#allocation2 + $0x20] sm:$0x1] %v1747_v0  ;;  %v1925_v9 = vld [vmem:[%s1875_s19 + $0x40] sm:$0xff]  ;;  %v1930_v10 = vld [vmem:[%s1875_s19 + $0x48] sm:$0xff]  ;;  %v1935_v11 = vld [vmem:[%s1875_s19 + $0x50] sm:$0xff]  ;;  %s1363_s29 = sshll.u32 %s1360_s26, 4  ;;  %s1364_s29 = int_to_ptr.hbm [resolvable:$true] %s1363_s29 }
  0x2d   : > { %359 = vst [vmem:[#allocation2 + $0x30] sm:$0x1] %v1747_v0  ;;  %v1940_v12 = vld [vmem:[%s1875_s19 + $0x58] sm:$0xff]  ;;  %v1945_v13 = vld [vmem:[%s1875_s19 + $0x60] sm:$0xff]  ;;  %v1950_v14 = vld [vmem:[%s1875_s19 + $0x68] sm:$0xff]  ;;  %s1668_s21 = sshra.s32 %s1364_s29, 4  ;;  %s1669_s21 = int_to_ptr.hbm [resolvable:$true] %s1668_s21 }
  0x2e   : > { %360 = vst [vmem:[#allocation2 + $0x40] sm:$0x1] %v1747_v0  ;;  %v1955_v15 = vld [vmem:[%s1875_s19 + $0x70] sm:$0xff]  ;;  %v1961_v16 = vld [vmem:[%s1875_s19 + $0x78] sm:$0xff]  ;;  %v1967_v17 = vld [vmem:[%s1875_s19 + $0x80] sm:$0xff]  ;;  %s1670_s30 = scalar_lea.hbm %s1669_s21, 256  ;;  %p1675_p10 = scmp.lt.s32.totalorder %s1669_s21, %s2536_s3 }
  0x2f   : > { %361 = vst [vmem:[#allocation2 + $0x50] sm:$0x1] %v1747_v0  ;;  %v263_v18 = vld [vmem:[%s1875_s19 + $0x88] sm:$0xff]  ;;  %v264_v19 = vld [vmem:[%s1875_s19 + $0x90] sm:$0xff]  ;;  %v265_v20 = vld [vmem:[%s1875_s19 + $0x98] sm:$0xff]  ;;  %p1671_p1 = scmp.ne.s32.totalorder %s1669_s21, %s1670_s30  ;;  %s1674_s11 = scalar_lea.hbm %s2536_s3, 512 }
  0x30   : > { %362 = vst [vmem:[#allocation2 + $0x60] sm:$0x1] %v1747_v0  ;;  %v1977_v21 = vld [vmem:[#allocation6] ss:$0 sm:$0xff]  ;;  %v1986_v25 = vld [vmem:[#allocation6 + $0x1] ss:$0 sm:$0xff]  ;;  %p1676_p12 = scmp.lt.s32.totalorder %s1674_s11, %s1670_s30 }
  0x31   : > { %363 = vst [vmem:[#allocation2 + $0x70] sm:$0x1] %v1747_v0  ;;  %v266_v22 = vld [vmem:[%s1875_s19 + $0xa0] sm:$0xff]  ;;  %v460_v24 = vmul.f32 0.0, %v1977_v21  ;;  %v267_v28 = vld [vmem:[%s1875_s19 + $0xa8] sm:$0xff]  ;;  %v559_v29 = vmul.f32 0.0, %v1986_v25  ;;  %v561_v48 = vmul.f32 %v1986_v25, %v1886_v1  ;;  %p1672_p4 = pnand %p1671_p1, %p1849_p5 }
  0x32   : > { %364 = vst [vmem:[#allocation2 + $0x80] sm:$0x1] %v1747_v0  ;;  %v1983_v23 = vld [vmem:[%s2535_s2] ss:$0 sm:$0xff]  ;;  %v1989_v27 = vld [vmem:[#allocation6 + $0x2] ss:$0 sm:$0xff]  ;;  %p1677_p13 = por %p1676_p12, %p1675_p10 }
  0x33   : > { %365 = vst [vmem:[#allocation2 + $0x90] sm:$0x1] %v1747_v0  ;;  %v492_v26 = vadd.f32 %v1983_v23, %v460_v24  ;;  %v658_v30 = vmul.f32 0.0, %v1989_v27  ;;  %v1994_v31 = vld [vmem:[#allocation6 + $0x4] ss:$0 sm:$0xff]  ;;  %v268_v35 = vld [vmem:[%s1875_s19 + $0xb0] sm:$0xff]  ;;  %p1673_p8 = pneg %p1672_p4 }
  0x34   : > { %366 = vst [vmem:[#allocation2 + $0xa0] sm:$0x1] %v1747_v0  ;;  %v1998_v37 = vld [vmem:[#allocation6 + $0x5] ss:$0 sm:$0xff]  ;;  %v2002_v42 = vld [vmem:[#allocation6 + $0x6] ss:$0 sm:$0xff] }
  0x35   : > { %367 = vst [vmem:[#allocation2 + $0xb0] sm:$0x1] %v1747_v0  ;;  %v591_v32 = vadd.f32 %v559_v29, %v492_v26  ;;  %v855_v44 = vmul.f32 %v1998_v37, %v1886_v1  ;;  %v2006_v45 = vld [vmem:[#allocation6 + $0x8] ss:$0 sm:$0xff]  ;;  %v856_v46 = vmul.f32 %v1998_v37, %v1890_v2  ;;  %v269_v49 = vld [vmem:[%s1875_s19 + $0xb8] sm:$0xff]  ;;  %v270_v61 = vld [vmem:[%s1875_s19 + $0xc0] sm:$0xff]  ;;  %p1678_p0 = pnand %p1677_p13, %p1673_p8 }
  0x36   : > { %368 = vst [vmem:[#allocation2 + $0xc0] sm:$0x1] %v1747_v0  ;;  %v2017_v57 = vld [vmem:[#allocation6 + $0x9] ss:$0 sm:$0xff]  ;;  %v2019_v58 = vld [vmem:[#allocation6 + $0xa] ss:$0 sm:$0xff] }
  0x37   : > { %369 = vst [vmem:[#allocation2 + $0xd0] sm:$0x1] %v1747_v0  ;;  %v690_v41 = vadd.f32 %v658_v30, %v591_v32 }
  0x38   : > { %370 = vst [vmem:[#allocation2 + $0xe0] sm:$0x1] %v1747_v0 }
  0x39   : > { %371 = vst [vmem:[#allocation2 + $0xf0] sm:$0x1] %v1747_v0 }
  0x3a   : > { %372 = vst [vmem:[#allocation2 + $0x100] sm:$0x1] %v1747_v0 }
  0x3b   : > { %406 = vst [vmem:[#allocation2 + $0x25f] sm:$0x1] %v1747_v0 }
  0x3c   : > { %407 = vst [vmem:[#allocation2 + $0x26f] sm:$0x1] %v1747_v0 }
  0x3d   : > { %408 = vst [vmem:[#allocation2 + $0x27f] sm:$0x1] %v1747_v0 }
  0x3e   : > { %409 = vst [vmem:[#allocation2 + $0x28f] sm:$0x1] %v1747_v0 }
  0x3f   : > { %410 = vst [vmem:[#allocation2 + $0x29f] sm:$0x1] %v1747_v0 }
  0x40   : > { %411 = vst [vmem:[#allocation2 + $0x2af] sm:$0x1] %v1747_v0 }
  0x41   : > { %412 = vst [vmem:[#allocation2 + $0x2bf] sm:$0x1] %v1747_v0 }
  0x42   : > { %413 = vst [vmem:[#allocation2 + $0x2cf] sm:$0x1] %v1747_v0 }
  0x43   : > { %414 = vst [vmem:[#allocation2 + $0x2df] sm:$0x1] %v1747_v0 }
  0x44   : > { %415 = vst [vmem:[#allocation2 + $0x2ef] sm:$0x1] %v1747_v0 }
  0x45   : > { %416 = vst [vmem:[#allocation2 + $0x2ff] sm:$0x1] %v1747_v0 }
  0x46   : > { %417 = vst [vmem:[#allocation2 + $0x30f] sm:$0x1] %v1747_v0 }
  0x47   : > { %418 = vst [vmem:[#allocation2 + $0x31f] sm:$0x1] %v1747_v0 }
  0x48   : > { %419 = vst [vmem:[#allocation2 + $0x32f] sm:$0x1] %v1747_v0 }
  0x49   : > { %420 = vst [vmem:[#allocation2 + $0x33f] sm:$0x1] %v1747_v0 }
  0x4a   : > { %421 = vst [vmem:[#allocation2 + $0x34f] sm:$0x1] %v1747_v0 }
  0x4b   : > { %325 = vst [vmem:[#allocation2 + $0x11] sm:$0xff] %v1886_v1 }
  0x4c   : > { %374 = vst [vmem:[#allocation2 + $0x24f] sm:$0xfe] %v1886_v1 }
  0x4d   : > { %326 = vst [vmem:[#allocation2 + $0x19] sm:$0x7f] %v1890_v2 }
  0x4e   : > { %375 = vst [vmem:[#allocation2 + $0x257] sm:$0xff] %v1890_v2 }
  0x4f   : > { %327 = vst [vmem:[#allocation2 + $0x21] sm:$0xff] %v1895_v3 }
  0x50   : > { %376 = vst [vmem:[#allocation2 + $0x25f] sm:$0xfe] %v1895_v3 }
  0x51   : > { %328 = vst [vmem:[#allocation2 + $0x29] sm:$0x7f] %v1900_v4 }
  0x52   : > { %377 = vst [vmem:[#allocation2 + $0x267] sm:$0xff] %v1900_v4  ;;  %v722_v33 = vld [vmem:[#allocation2 + $0x10] sm:$0xff] }
  0x53   : > { %329 = vst [vmem:[#allocation2 + $0x31] sm:$0xff] %v1905_v5  ;;  %v757_v36 = vmul.f32 %v1994_v31, %v722_v33  ;;  %v462_v40 = vmul.f32 %v1977_v21, %v722_v33  ;;  %v562_v33 = vmul.f32 %v1986_v25, %v1890_v2 }
  0x54   : > { %378 = vst [vmem:[#allocation2 + $0x26f] sm:$0xfe] %v1905_v5  ;;  %v723_v34 = vld [vmem:[#allocation2 + $0x18] sm:$0xff] }
  0x55   : > { %330 = vst [vmem:[#allocation2 + $0x39] sm:$0x7f] %v1910_v6  ;;  %v919_v38 = vld [vmem:[#allocation2 + $0x250] sm:$0xff]  ;;  %v758_v39 = vmul.f32 %v1994_v31, %v723_v34  ;;  %v920_v43 = vld [vmem:[#allocation2 + $0x258] sm:$0xff]  ;;  %v494_v47 = vadd.f32 %v1983_v23, %v462_v40  ;;  %v789_v50 = vadd.f32 %v757_v36, %v690_v41  ;;  %v463_v55 = vmul.f32 %v1977_v21, %v723_v34 }
  0x56   : > { %379 = vst [vmem:[#allocation2 + $0x277] sm:$0xff] %v1910_v6  ;;  %v953_v51 = vmul.f32 %v2002_v42, %v919_v38  ;;  %v1018_v52 = vld [vmem:[#allocation2 + $0x20] sm:$0xff]  ;;  %v954_v54 = vmul.f32 %v2002_v42, %v920_v43  ;;  %v660_v1 = vmul.f32 %v1989_v27, %v919_v38  ;;  %v661_v34 = vmul.f32 %v1989_v27, %v920_v43 }
  0x57   : > { %331 = vst [vmem:[#allocation2 + $0x41] sm:$0xff] %v1915_v7  ;;  %v790_v53 = vadd.f32 %v758_v39, %v690_v41  ;;  %v887_v56 = vadd.f32 %v855_v44, %v789_v50  ;;  %v593_v60 = vadd.f32 %v561_v48, %v494_v47  ;;  %v1053_v62 = vmul.f32 %v2006_v45, %v1018_v52 }
  0x58   : > { %380 = vst [vmem:[#allocation2 + $0x27f] sm:$0xfe] %v1915_v7  ;;  %v1019_v0 = vld [vmem:[#allocation2 + $0x28] sm:$0xff]  ;;  %v495_v32 = vadd.f32 %v1983_v23, %v463_v55  ;;  %v1153_v40 = vmul.f32 %v2017_v57, %v1900_v4  ;;  %v858_v50 = vmul.f32 %v1998_v37, %v1900_v4 }
  0x59   : > { %332 = vst [vmem:[#allocation2 + $0x49] sm:$0x7f] %v1920_v8  ;;  %v888_v59 = vadd.f32 %v856_v46, %v790_v53  ;;  %v1217_v63 = vld [vmem:[#allocation2 + $0x260] sm:$0xff]  ;;  %v2028_v26 = vld [vmem:[#allocation2 + $0x268] sm:$0xff]  ;;  %v692_v29 = vadd.f32 %v660_v1, %v593_v60  ;;  %v1054_v39 = vmul.f32 %v2006_v45, %v1019_v0  ;;  %v1154_v60 = vmul.f32 %v2017_v57, %v1905_v5 }
  0x5a   : > { %381 = vst [vmem:[#allocation2 + $0x287] sm:$0xff] %v1920_v8  ;;  %v2032_v30 = vld [vmem:[#allocation2 + $0x30] sm:$0xff]  ;;  %v1251_v38 = vmul.f32 %v2019_v58, %v1217_v63  ;;  %v1252_v41 = vmul.f32 %v2019_v58, %v2028_v26  ;;  %v955_v2 = vmul.f32 %v2002_v42, %v1217_v63  ;;  %v594_v43 = vadd.f32 %v562_v33, %v495_v32 }
  0x5b   : > { %333 = vst [vmem:[#allocation2 + $0x51] sm:$0xff] %v1925_v9  ;;  %v986_v24 = vadd.f32 %v954_v54, %v888_v59  ;;  %v1055_v48 = vmul.f32 %v2006_v45, %v2032_v30 }
  0x5c   : > { %382 = vst [vmem:[#allocation2 + $0x28f] sm:$0xfe] %v1925_v9  ;;  %v693_v53 = vadd.f32 %v661_v34, %v594_v43  ;;  %v2054_v54 = vld [vmem:[#allocation2 + $0x38] sm:$0xff]  ;;  %v859_v34 = vmul.f32 %v1998_v37, %v1905_v5  ;;  %v564_v43 = vmul.f32 %v1986_v25, %v1900_v4  ;;  %v1156_v4 = vmul.f32 %v2017_v57, %v1915_v7 }
  0x5d   : > { %334 = vst [vmem:[#allocation2 + $0x59] sm:$0x7f] %v1930_v10  ;;  %v2046_v46 = vld [vmem:[#allocation2 + $0x270] sm:$0xff]  ;;  %v1086_v47 = vadd.f32 %v1054_v39, %v986_v24 }
  0x5e   : > { %383 = vst [vmem:[#allocation2 + $0x297] sm:$0xff] %v1930_v10 }
  0x5f   : > { %335 = vst [vmem:[#allocation2 + $0x61] sm:$0xff] %v1935_v11  ;;  %v1185_v24 = vadd.f32 %v1153_v40, %v1086_v47  ;;  %v274_v47 = vld [vmem:[%s1875_s19 + $0xe0] sm:$0xff] }
  0x60   : > { %384 = vst [vmem:[#allocation2 + $0x29f] sm:$0xfe] %v1935_v11 }
  0x61   : > { %336 = vst [vmem:[#allocation2 + $0x69] sm:$0x7f] %v1940_v12 }
  0x62   : > { %385 = vst [vmem:[#allocation2 + $0x2a7] sm:$0xff] %v1940_v12 }
  0x63   : > { %337 = vst [vmem:[#allocation2 + $0x71] sm:$0xff] %v1945_v13 }
  0x64   : > { %386 = vst [vmem:[#allocation2 + $0x2af] sm:$0xfe] %v1945_v13 }
  0x65   : > { %338 = vst [vmem:[#allocation2 + $0x79] sm:$0x7f] %v1950_v14 }
  0x66   : > { %305 = vst [vmem:[#allocation2 + $0x198] sm:$0xff] %v1950_v14 }
  0x67   : > { %387 = vst [vmem:[#allocation2 + $0x2b7] sm:$0xff] %v1950_v14 }
  0x68   : > { %339 = vst [vmem:[#allocation2 + $0x81] sm:$0xff] %v1955_v15 }
  0x69   : > { %306 = vst [vmem:[#allocation2 + $0x1a0] sm:$0xff] %v1955_v15 }
  0x6a   : > { %388 = vst [vmem:[#allocation2 + $0x2bf] sm:$0xfe] %v1955_v15 }
  0x6b   : > { %340 = vst [vmem:[#allocation2 + $0x89] sm:$0x7f] %v1961_v16 }
  0x6c   : > { %307 = vst [vmem:[#allocation2 + $0x1a8] sm:$0xff] %v1961_v16 }
  0x6d   : > { %389 = vst [vmem:[#allocation2 + $0x2c7] sm:$0xff] %v1961_v16 }
  0x6e   : > { %341 = vst [vmem:[#allocation2 + $0x91] sm:$0xff] %v1967_v17 }
  0x6f   : > { %308 = vst [vmem:[#allocation2 + $0x1b0] sm:$0xff] %v1967_v17 }
  0x70   : > { %390 = vst [vmem:[#allocation2 + $0x2cf] sm:$0xfe] %v1967_v17 }
  0x71   : > { %342 = vst [vmem:[#allocation2 + $0x99] sm:$0x7f] %v263_v18 }
  0x72   : > { %309 = vst [vmem:[#allocation2 + $0x1b8] sm:$0xff] %v263_v18 }
  0x73   : > { %391 = vst [vmem:[#allocation2 + $0x2d7] sm:$0xff] %v263_v18  ;;  %v759_v18 = vmul.f32 %v1994_v31, %v1018_v52 }
  0x74   : > { %343 = vst [vmem:[#allocation2 + $0xa1] sm:$0xff] %v264_v19 }
  0x75   : > { %310 = vst [vmem:[#allocation2 + $0x1c0] sm:$0xff] %v264_v19  ;;  %v791_v44 = vadd.f32 %v759_v18, %v692_v29  ;;  %v1155_v29 = vmul.f32 %v2017_v57, %v1910_v6 }
  0x76   : > { %392 = vst [vmem:[#allocation2 + $0x2df] sm:$0xfe] %v264_v19  ;;  %v464_v19 = vmul.f32 %v1977_v21, %v1018_v52 }
  0x77   : > { %344 = vst [vmem:[#allocation2 + $0xa9] sm:$0x7f] %v265_v20 }
  0x78   : > { %311 = vst [vmem:[#allocation2 + $0x1c8] sm:$0xff] %v265_v20  ;;  %v496_v55 = vadd.f32 %v1983_v23, %v464_v19  ;;  %v956_v19 = vmul.f32 %v2002_v42, %v2028_v26 }
  0x79   : > { %393 = vst [vmem:[#allocation2 + $0x2e7] sm:$0xff] %v265_v20  ;;  %v985_v20 = vadd.f32 %v953_v51, %v887_v56  ;;  %v272_v51 = vld [vmem:[%s1875_s19 + $0xd0] sm:$0xff]  ;;  %v563_v56 = vmul.f32 %v1986_v25, %v1895_v3 }
  0x7a   : > { %345 = vst [vmem:[#allocation2 + $0xb1] sm:$0xff] %v266_v22 }
  0x7b   : > { %312 = vst [vmem:[#allocation2 + $0x1d0] sm:$0xff] %v266_v22  ;;  %v1085_v36 = vadd.f32 %v1053_v62, %v985_v20  ;;  %v662_v62 = vmul.f32 %v1989_v27, %v1217_v63  ;;  %v2068_v20 = vld [vmem:[#allocation2 + $0x278] sm:$0xff]  ;;  %v761_v63 = vmul.f32 %v1994_v31, %v2032_v30 }
  0x7c   : > { %394 = vst [vmem:[#allocation2 + $0x2ef] sm:$0xfe] %v266_v22  ;;  %v1152_v22 = vmul.f32 %v2017_v57, %v1895_v3 }
  0x7d   : > { %346 = vst [vmem:[#allocation2 + $0xb9] sm:$0x7f] %v267_v28 }
  0x7e   : > { %313 = vst [vmem:[#allocation2 + $0x1d8] sm:$0xff] %v267_v28  ;;  %v1184_v59 = vadd.f32 %v1152_v22, %v1085_v36  ;;  %v273_v22 = vld [vmem:[%s1875_s19 + $0xd8] sm:$0xff]  ;;  %v465_v36 = vmul.f32 %v1977_v21, %v1019_v0 }
  0x7f   : > { %395 = vst [vmem:[#allocation2 + $0x2f7] sm:$0xff] %v267_v28  ;;  %v857_v28 = vmul.f32 %v1998_v37, %v1895_v3  ;;  %v595_v3 = vadd.f32 %v563_v56, %v496_v55 }
  0x80   : > { %347 = vst [vmem:[#allocation2 + $0xc1] sm:$0xff] %v268_v35  ;;  %v2082_v39 = vadd.f32 %v1251_v38, %v1184_v59  ;;  %v2094_v38 = vadd.f32 %v1252_v41, %v1185_v24  ;;  %v2106_v59 = vld [vmem:[#allocation2 + $0x48] sm:$0xff] }
  0x81   : > { %314 = vst [vmem:[#allocation2 + $0x1e0] sm:$0xff] %v268_v35  ;;  %v889_v52 = vadd.f32 %v857_v28, %v791_v44  ;;  %v1056_v28 = vmul.f32 %v2006_v45, %v2054_v54  ;;  %v694_v33 = vadd.f32 %v662_v62, %v595_v3  ;;  %v1254_v44 = vmul.f32 %v2019_v58, %v2068_v20  ;;  %v275_v41 = vld [vmem:[%s1875_s19 + $0xe8] sm:$0xff] }
  0x82   : > { %396 = vst [vmem:[#allocation2 + $0x2ff] sm:$0xfe] %v268_v35  ;;  %v271_v35 = vld [vmem:[%s1875_s19 + $0xc8] sm:$0xff]  ;;  %v565_v3 = vmul.f32 %v1986_v25, %v1905_v5  ;;  %v664_v5 = vmul.f32 %v1989_v27, %v2046_v46 }
  0x83   : > { %348 = vst [vmem:[#allocation2 + $0xc9] sm:$0x7f] %v269_v49  ;;  %v987_v1 = vadd.f32 %v955_v2, %v889_v52  ;;  %v2086_v2 = vld [vmem:[#allocation2 + $0x280] sm:$0xff]  ;;  %v497_v52 = vadd.f32 %v1983_v23, %v465_v36 }
  0x84   : > { %315 = vst [vmem:[#allocation2 + $0x1e8] sm:$0xff] %v269_v49  ;;  %v2104_v56 = vmul.f32 %v2019_v58, %v2086_v2 }
  0x85   : > { %397 = vst [vmem:[#allocation2 + $0x307] sm:$0xff] %v269_v49  ;;  %v760_v49 = vmul.f32 %v1994_v31, %v1019_v0  ;;  %v1087_v40 = vadd.f32 %v1055_v48, %v987_v1  ;;  %v663_v0 = vmul.f32 %v1989_v27, %v2028_v26  ;;  %v957_v48 = vmul.f32 %v2002_v42, %v2046_v46 }
  0x86   : > { %349 = vst [vmem:[#allocation2 + $0xd1] sm:$0xff] %v270_v61  ;;  %v596_v26 = vadd.f32 %v564_v43, %v497_v52  ;;  %v762_v1 = vmul.f32 %v1994_v31, %v2054_v54  ;;  %v467_v52 = vmul.f32 %v1977_v21, %v2054_v54 }
  0x87   : > { %316 = vst [vmem:[#allocation2 + $0x1f0] sm:$0xff] %v270_v61  ;;  %v792_v18 = vadd.f32 %v760_v49, %v693_v53  ;;  %v1186_v62 = vadd.f32 %v1154_v60, %v1087_v40  ;;  %v958_v60 = vmul.f32 %v2002_v42, %v2068_v20 }
  0x88   : > { %398 = vst [vmem:[#allocation2 + $0x30f] sm:$0xfe] %v270_v61  ;;  %v2063_v61 = vmul.f32 %v2019_v58, %v2046_v46  ;;  %v695_v24 = vadd.f32 %v663_v0, %v596_v26  ;;  %v566_v46 = vmul.f32 %v1986_v25, %v1910_v6  ;;  %v665_v26 = vmul.f32 %v1989_v27, %v2068_v20 }
  0x89   : > { %350 = vst [vmem:[#allocation2 + $0xd9] sm:$0x7f] %v271_v35  ;;  %v890_v32 = vadd.f32 %v858_v50, %v792_v18  ;;  %v793_v50 = vadd.f32 %v761_v63, %v694_v33  ;;  %v2111_v18 = vld [vmem:[#allocation2 + $0x288] sm:$0xff]  ;;  %v1058_v63 = vmul.f32 %v2006_v45, %v2106_v59  ;;  %v276_v33 = vld [vmem:[%s1875_s19 + $0xf0] sm:$0xff] }
  0x8a   : > { %317 = vst [vmem:[#allocation2 + $0x1f8] sm:$0xff] %v271_v35  ;;  %v794_v40 = vadd.f32 %v762_v1, %v695_v24  ;;  %v1256_v43 = vmul.f32 %v2019_v58, %v2111_v18 }
  0x8b   : > { %399 = vst [vmem:[#allocation2 + $0x317] sm:$0xff] %v271_v35  ;;  %v2079_v35 = vld [vmem:[#allocation2 + $0x40] sm:$0xff]  ;;  %v988_v49 = vadd.f32 %v956_v19, %v890_v32  ;;  %v891_v55 = vadd.f32 %v859_v34, %v793_v50  ;;  %v466_v19 = vmul.f32 %v1977_v21, %v2032_v30  ;;  %v1157_v32 = vmul.f32 %v2017_v57, %v1920_v8 }
  0x8c   : > { %351 = vst [vmem:[#allocation2 + $0xe1] sm:$0xff] %v272_v51  ;;  %v763_v0 = vmul.f32 %v1994_v31, %v2079_v35  ;;  %v468_v24 = vmul.f32 %v1977_v21, %v2079_v35 }
  0x8d   : > { %318 = vst [vmem:[#allocation2 + $0x200] sm:$0xff] %v272_v51  ;;  %v1088_v53 = vadd.f32 %v1056_v28, %v988_v49  ;;  %v860_v28 = vmul.f32 %v1998_v37, %v1910_v6  ;;  %v498_v30 = vadd.f32 %v1983_v23, %v466_v19  ;;  %v1285_v49 = vadd.f32 %v2063_v61, %v1186_v62  ;;  %v277_v61 = vld [vmem:[%s1875_s19 + $0xf8] sm:$0xff] }
  0x8e   : > { %400 = vst [vmem:[#allocation2 + $0x31f] sm:$0xfe] %v272_v51  ;;  %v1057_v51 = vmul.f32 %v2006_v45, %v2079_v35  ;;  %v499_v6 = vadd.f32 %v1983_v23, %v467_v52  ;;  %v1158_v19 = vmul.f32 %v2017_v57, %v1925_v9  ;;  %v500_v35 = vadd.f32 %v1983_v23, %v468_v24 }
  0x8f   : > { %352 = vst [vmem:[#allocation2 + $0xe9] sm:$0x7f] %v273_v22  ;;  %v1187_v34 = vadd.f32 %v1155_v29, %v1088_v53  ;;  %v597_v50 = vadd.f32 %v565_v3, %v498_v30  ;;  %v892_v29 = vadd.f32 %v860_v28, %v794_v40  ;;  %v567_v28 = vmul.f32 %v1986_v25, %v1915_v7 }
  0x90   : > { %319 = vst [vmem:[#allocation2 + $0x208] sm:$0xff] %v273_v22  ;;  %v469_v52 = vmul.f32 %v1977_v21, %v2106_v59 }
  0x91   : > { %401 = vst [vmem:[#allocation2 + $0x327] sm:$0xff] %v273_v22  ;;  %v989_v22 = vadd.f32 %v957_v48, %v891_v55  ;;  %v861_v48 = vmul.f32 %v1998_v37, %v1915_v7  ;;  %v696_v53 = vadd.f32 %v664_v5, %v597_v50  ;;  %v2147_v55 = vld [vmem:[#allocation2 + $0x290] sm:$0xff]  ;;  %v990_v1 = vadd.f32 %v958_v60, %v892_v29  ;;  %v1025_v50 = vld [vmem:[#allocation2 + $0x58] sm:$0xff] }
  0x92   : > { %353 = vst [vmem:[#allocation2 + $0xf1] sm:$0xff] %v274_v47  ;;  %v1257_v20 = vmul.f32 %v2019_v58, %v2147_v55  ;;  %v666_v7 = vmul.f32 %v1989_v27, %v2086_v2  ;;  %v863_v29 = vmul.f32 %v1998_v37, %v1925_v9 }
  0x93   : > { %320 = vst [vmem:[#allocation2 + $0x210] sm:$0xff] %v274_v47  ;;  %v1089_v36 = vadd.f32 %v1057_v51, %v989_v22  ;;  %v959_v51 = vmul.f32 %v2002_v42, %v2086_v2  ;;  %v795_v3 = vadd.f32 %v763_v0, %v696_v53  ;;  %v598_v22 = vadd.f32 %v566_v46, %v499_v6 }
  0x94   : > { %402 = vst [vmem:[#allocation2 + $0x32f] sm:$0xfe] %v274_v47  ;;  %v2131_v47 = vld [vmem:[#allocation2 + $0x50] sm:$0xff]  ;;  %v1090_v30 = vadd.f32 %v1058_v63, %v990_v1  ;;  %v568_v0 = vmul.f32 %v1986_v25, %v1920_v8  ;;  %v864_v1 = vmul.f32 %v1998_v37, %v1930_v10 }
  0x95   : > { %354 = vst [vmem:[#allocation2 + $0xf9] sm:$0x7f] %v275_v41  ;;  %v1059_v54 = vmul.f32 %v2006_v45, %v2131_v47  ;;  %v1188_v62 = vadd.f32 %v1156_v4, %v1089_v36  ;;  %v862_v4 = vmul.f32 %v1998_v37, %v1920_v8  ;;  %v893_v60 = vadd.f32 %v861_v48, %v795_v3 }
  0x96   : > { %321 = vst [vmem:[#allocation2 + $0x218] sm:$0xff] %v275_v41  ;;  %v697_v5 = vadd.f32 %v665_v26, %v598_v22  ;;  %v765_v36 = vmul.f32 %v1994_v31, %v2131_v47  ;;  %v961_v8 = vmul.f32 %v2002_v42, %v2147_v55  ;;  %v470_v3 = vmul.f32 %v1977_v21, %v2131_v47 }
  0x97   : > { %403 = vst [vmem:[#allocation2 + $0x337] sm:$0xff] %v275_v41  ;;  %v1286_v41 = vadd.f32 %v1254_v44, %v1187_v34  ;;  %v764_v44 = vmul.f32 %v1994_v31, %v2106_v59  ;;  %v1287_v63 = vadd.f32 %v2104_v56, %v1188_v62  ;;  %v960_v34 = vmul.f32 %v2002_v42, %v2111_v18  ;;  %v1224_v56 = vld [vmem:[#allocation2 + $0x298] sm:$0xff]  ;;  %v1225_v62 = vld [vmem:[#allocation2 + $0x2a0] sm:$0xff] }
  0x98   : > { %355 = vst [vmem:[#allocation2 + $0x101] sm:$0xff] %v276_v33  ;;  %v991_v40 = vadd.f32 %v959_v51, %v893_v60  ;;  %v501_v59 = vadd.f32 %v1983_v23, %v469_v52  ;;  %v1258_v53 = vmul.f32 %v2019_v58, %v1224_v56  ;;  %v569_v22 = vmul.f32 %v1986_v25, %v1925_v9  ;;  %v1226_v52 = vld [vmem:[#allocation2 + $0x2a8] sm:$0xff] }
  0x99   : > { %322 = vst [vmem:[#allocation2 + $0x220] sm:$0xff] %v276_v33  ;;  %v796_v2 = vadd.f32 %v764_v44, %v697_v5  ;;  %v502_v60 = vadd.f32 %v1983_v23, %v470_v3  ;;  %v668_v5 = vmul.f32 %v1989_v27, %v2147_v55  ;;  %v570_v55 = vmul.f32 %v1986_v25, %v1930_v10  ;;  %v1029_v3 = vld [vmem:[#allocation2 + $0x78] sm:$0xff] }
  0x9a   : > { %404 = vst [vmem:[#allocation2 + $0x33f] sm:$0xfe] %v276_v33  ;;  %v1189_v33 = vadd.f32 %v1157_v32, %v1090_v30  ;;  %v599_v32 = vadd.f32 %v567_v28, %v500_v35  ;;  %v1091_v48 = vadd.f32 %v1059_v54, %v991_v40  ;;  %v1026_v54 = vld [vmem:[#allocation2 + $0x60] sm:$0xff]  ;;  %v600_v26 = vadd.f32 %v568_v0, %v501_v59 }
  0x9b   : > { %356 = vst [vmem:[#allocation2 + $0x109] sm:$0x7f] %v277_v61  ;;  %v894_v51 = vadd.f32 %v862_v4, %v796_v2  ;;  %v1061_v44 = vmul.f32 %v2006_v45, %v1026_v54  ;;  %v1160_v4 = vmul.f32 %v2017_v57, %v1935_v11  ;;  %v1260_v59 = vmul.f32 %v2019_v58, %v1226_v52 }
  0x9c   : > { %323 = vst [vmem:[#allocation2 + $0x228] sm:$0xff] %v277_v61  ;;  %v1288_v46 = vadd.f32 %v1256_v43, %v1189_v33  ;;  %v1159_v43 = vmul.f32 %v2017_v57, %v1930_v10  ;;  %v601_v33 = vadd.f32 %v569_v22, %v502_v60  ;;  %v571_v22 = vmul.f32 %v1986_v25, %v1935_v11 }
  0x9d   : > { %405 = vst [vmem:[#allocation2 + $0x347] sm:$0xff] %v277_v61  ;;  %v698_v61 = vadd.f32 %v666_v7, %v599_v32  ;;  %v1259_v7 = vmul.f32 %v2019_v58, %v1225_v62 }
  0x9e   : > { %1315 = vst [vmem:[%s2174_s22] sm:$0xff] %v2082_v39  ;;  %v667_v39 = vmul.f32 %v1989_v27, %v2111_v18  ;;  %v1190_v18 = vadd.f32 %v1158_v19, %v1091_v48 }
  0x9f   : > { %1316 = vst [vmem:[%s2174_s22 + $0x8] sm:$0xff] %v2094_v38  ;;  %v1060_v38 = vmul.f32 %v2006_v45, %v1025_v50  ;;  %v797_v6 = vadd.f32 %v765_v36, %v698_v61  ;;  %v471_v36 = vmul.f32 %v1977_v21, %v1025_v50  ;;  %v1161_v61 = vmul.f32 %v2017_v57, %v1940_v12 }
  0xa0   : > { %1317 = vst [vmem:[%s2174_s22 + $0x10] sm:$0xff] %v1285_v49  ;;  %v992_v49 = vadd.f32 %v960_v34, %v894_v51  ;;  %v1289_v24 = vadd.f32 %v1257_v20, %v1190_v18  ;;  %v699_v30 = vadd.f32 %v667_v39, %v600_v26  ;;  %v962_v20 = vmul.f32 %v2002_v42, %v1224_v56 }
  0xa1   : > { %1318 = vst [vmem:[%s2174_s22 + $0x18] sm:$0xff] %v1286_v41  ;;  %v766_v41 = vmul.f32 %v1994_v31, %v1025_v50  ;;  %v895_v28 = vadd.f32 %v863_v29, %v797_v6  ;;  %v767_v34 = vmul.f32 %v1994_v31, %v1026_v54  ;;  %v865_v29 = vmul.f32 %v1998_v37, %v1935_v11 }
  0xa2   : > { %1319 = vst [vmem:[%s2174_s22 + $0x20] sm:$0xff] %v1287_v63  ;;  %v1092_v19 = vadd.f32 %v1060_v38, %v992_v49  ;;  %v1027_v63 = vld [vmem:[#allocation2 + $0x68] sm:$0xff]  ;;  %v503_v0 = vadd.f32 %v1983_v23, %v471_v36  ;;  %v669_v39 = vmul.f32 %v1989_v27, %v1224_v56  ;;  %v963_v38 = vmul.f32 %v2002_v42, %v1225_v62  ;;  %v1227_v49 = vld [vmem:[#allocation2 + $0x2b0] sm:$0xff] }
  0xa3   : > { %1320 = vst [vmem:[%s2174_s22 + $0x28] sm:$0xff] %v1288_v46  ;;  %v993_v47 = vadd.f32 %v961_v8, %v895_v28  ;;  %v798_v9 = vadd.f32 %v766_v41, %v699_v30  ;;  %v700_v46 = vadd.f32 %v668_v5, %v601_v33  ;;  %v1062_v50 = vmul.f32 %v2006_v45, %v1027_v63 }
  0xa4   : > { %1321 = vst [vmem:[%s2174_s22 + $0x30] sm:$0xff] %v1289_v24  ;;  %v1191_v35 = vadd.f32 %v1159_v43, %v1092_v19  ;;  %v1028_v43 = vld [vmem:[#allocation2 + $0x70] sm:$0xff]  ;;  %v768_v56 = vmul.f32 %v1994_v31, %v1027_v63  ;;  %v472_v6 = vmul.f32 %v1977_v21, %v1026_v54  ;;  %v670_v30 = vmul.f32 %v1989_v27, %v1225_v62 }
  0xa5   : > { %v1093_v2 = vadd.f32 %v1061_v44, %v993_v47  ;;  %v896_v32 = vadd.f32 %v864_v1, %v798_v9  ;;  %v799_v10 = vadd.f32 %v767_v34, %v700_v46  ;;  %v866_v1 = vmul.f32 %v1998_v37, %v1940_v12 }
  0xa6   : > { %v1290_v40 = vadd.f32 %v1258_v53, %v1191_v35  ;;  %v602_v53 = vadd.f32 %v570_v55, %v503_v0  ;;  %v1063_v19 = vmul.f32 %v2006_v45, %v1028_v43  ;;  %v504_v28 = vadd.f32 %v1983_v23, %v472_v6 }
  0xa7   : > { %v1192_v48 = vadd.f32 %v1160_v4, %v1093_v2  ;;  %v994_v51 = vadd.f32 %v962_v20, %v896_v32  ;;  %v897_v26 = vadd.f32 %v865_v29, %v799_v10  ;;  %v1162_v54 = vmul.f32 %v2017_v57, %v1945_v13  ;;  %v1228_v20 = vld [vmem:[#allocation2 + $0x2b8] sm:$0xff]  ;;  %v1229_v10 = vld [vmem:[#allocation2 + $0x2c0] sm:$0xff] }
  0xa8   : > { %1322 = vst [vmem:[%s2174_s22 + $0x38] sm:$0xff] %v1290_v40  ;;  %v701_v41 = vadd.f32 %v669_v39, %v602_v53  ;;  %v1261_v4 = vmul.f32 %v2019_v58, %v1227_v49  ;;  %v964_v35 = vmul.f32 %v2002_v42, %v1226_v52  ;;  %v1064_v11 = vmul.f32 %v2006_v45, %v1029_v3 }
  0xa9   : > { %v1291_v8 = vadd.f32 %v1259_v7, %v1192_v48  ;;  %v1094_v18 = vadd.f32 %v1062_v50, %v994_v51  ;;  %v995_v44 = vadd.f32 %v963_v38, %v897_v26  ;;  %v603_v47 = vadd.f32 %v571_v22, %v504_v28  ;;  %v1030_v51 = vld [vmem:[#allocation2 + $0x80] sm:$0xff]  ;;  %v540_v26 = vld [vmem:[#allocation2 + $0x198] sm:$0xff] }
  0xaa   : > { %v800_v60 = vadd.f32 %v768_v56, %v701_v41  ;;  %v473_v33 = vmul.f32 %v1977_v21, %v1027_v63  ;;  %v572_v62 = vmul.f32 %v1986_v25, %v1940_v12  ;;  %v1163_v34 = vmul.f32 %v2017_v57, %v1950_v14 }
  0xab   : > { %1323 = vst [vmem:[%s2174_s22 + $0x40] sm:$0xff] %v1291_v8  ;;  %v1193_v24 = vadd.f32 %v1161_v61, %v1094_v18  ;;  %v1095_v7 = vadd.f32 %v1063_v19, %v995_v44  ;;  %v702_v36 = vadd.f32 %v670_v30, %v603_v47  ;;  %v769_v40 = vmul.f32 %v1994_v31, %v1028_v43  ;;  %v1230_v44 = vld [vmem:[#allocation2 + $0x2c8] sm:$0xff] }
  0xac   : > { %v898_v9 = vadd.f32 %v866_v1, %v800_v60  ;;  %v867_v2 = vmul.f32 %v1998_v37, %v1945_v13  ;;  %v505_v46 = vadd.f32 %v1983_v23, %v473_v33  ;;  %v671_v63 = vmul.f32 %v1989_v27, %v1226_v52 }
  0xad   : > { %v1292_v5 = vadd.f32 %v1260_v59, %v1193_v24  ;;  %v1194_v32 = vadd.f32 %v1162_v54, %v1095_v7  ;;  %v1262_v29 = vmul.f32 %v2019_v58, %v1228_v20  ;;  %v801_v12 = vadd.f32 %v769_v40, %v702_v36 }
  0xae   : > { %v996_v55 = vadd.f32 %v964_v35, %v898_v9  ;;  %v965_v0 = vmul.f32 %v2002_v42, %v1227_v49  ;;  %v604_v50 = vadd.f32 %v572_v62, %v505_v46  ;;  %v474_v61 = vmul.f32 %v1977_v21, %v1028_v43  ;;  %v1032_v9 = vld [vmem:[#allocation2 + $0x90] sm:$0xff] }
  0xaf   : > { %1324 = vst [vmem:[%s2174_s22 + $0x48] sm:$0xff] %v1292_v5  ;;  %v1293_v39 = vadd.f32 %v1261_v4, %v1194_v32  ;;  %v899_v59 = vadd.f32 %v867_v2, %v801_v12  ;;  %v770_v38 = vmul.f32 %v1994_v31, %v1029_v3  ;;  %v868_v53 = vmul.f32 %v1998_v37, %v1950_v14 }
  0xb0   : > { %v1096_v48 = vadd.f32 %v1064_v11, %v996_v55  ;;  %v573_v52 = vmul.f32 %v1986_v25, %v1945_v13  ;;  %v703_v18 = vadd.f32 %v671_v63, %v604_v50  ;;  %v506_v56 = vadd.f32 %v1983_v23, %v474_v61  ;;  %v1031_v13 = vld [vmem:[#allocation2 + $0x88] sm:$0xff]  ;;  %v541_v11 = vld [vmem:[#allocation2 + $0x1a0] sm:$0xff] }
  0xb1   : > { %1325 = vst [vmem:[%s2174_s22 + $0x50] sm:$0xff] %v1293_v39  ;;  %v672_v6 = vmul.f32 %v1989_v27, %v1227_v49  ;;  %v997_v43 = vadd.f32 %v965_v0, %v899_v59  ;;  %v1065_v41 = vmul.f32 %v2006_v45, %v1030_v51  ;;  %v1164_v1 = vmul.f32 %v2017_v57, %v1955_v15 }
  0xb2   : > { %v1195_v8 = vadd.f32 %v1163_v34, %v1096_v48  ;;  %v1263_v14 = vmul.f32 %v2019_v58, %v1229_v10  ;;  %v802_v24 = vadd.f32 %v770_v38, %v703_v18  ;;  %v605_v19 = vadd.f32 %v573_v52, %v506_v56  ;;  %v1231_v38 = vld [vmem:[#allocation2 + $0x2d0] sm:$0xff]  ;;  %v1133_v18 = vld [vmem:[#allocation2 + $0x1b8] sm:$0xff] }
  0xb3   : > { %v1097_v28 = vadd.f32 %v1065_v41, %v997_v43  ;;  %v966_v30 = vmul.f32 %v2002_v42, %v1228_v20  ;;  %v475_v54 = vmul.f32 %v1977_v21, %v1029_v3  ;;  %v574_v49 = vmul.f32 %v1986_v25, %v540_v26  ;;  %v837_v41 = vld [vmem:[#allocation2 + $0x1b0] sm:$0xff] }
  0xb4   : > { %v1294_v22 = vadd.f32 %v1262_v29, %v1195_v8  ;;  %v900_v4 = vadd.f32 %v868_v53, %v802_v24  ;;  %v704_v60 = vadd.f32 %v672_v6, %v605_v19  ;;  %v771_v5 = vmul.f32 %v1994_v31, %v1030_v51  ;;  %v1033_v8 = vld [vmem:[#allocation2 + $0x98] sm:$0xff] }
  0xb5   : > { %v869_v35 = vmul.f32 %v1998_v37, %v1955_v15  ;;  %v1196_v47 = vadd.f32 %v1164_v1, %v1097_v28  ;;  %v1066_v7 = vmul.f32 %v2006_v45, %v1031_v13  ;;  %v507_v33 = vadd.f32 %v1983_v23, %v475_v54  ;;  %v836_v15 = vld [vmem:[#allocation2 + $0x1a8] sm:$0xff] }
  0xb6   : > { %1326 = vst [vmem:[%s2174_s22 + $0x58] sm:$0xff] %v1294_v22  ;;  %v673_v3 = vmul.f32 %v1989_v27, %v1228_v20  ;;  %v998_v62 = vadd.f32 %v966_v30, %v900_v4  ;;  %v1165_v34 = vmul.f32 %v2017_v57, %v1961_v16  ;;  %v1264_v36 = vmul.f32 %v2019_v58, %v1230_v44 }
  0xb7   : > { %v803_v40 = vadd.f32 %v771_v5, %v704_v60  ;;  %v1295_v2 = vadd.f32 %v1263_v14, %v1196_v47  ;;  %v606_v32 = vadd.f32 %v574_v49, %v507_v33  ;;  %v476_v55 = vmul.f32 %v1977_v21, %v1030_v51  ;;  %v1232_v49 = vld [vmem:[#allocation2 + $0x2d8] sm:$0xff]  ;;  %v1034_v5 = vld [vmem:[#allocation2 + $0xa0] sm:$0xff] }
  0xb8   : > { %v575_v46 = vmul.f32 %v1986_v25, %v541_v11  ;;  %v1098_v63 = vadd.f32 %v1066_v7, %v998_v62  ;;  %v967_v12 = vmul.f32 %v2002_v42, %v1229_v10  ;;  %v1067_v20 = vmul.f32 %v2006_v45, %v1032_v9  ;;  %v1134_v62 = vld [vmem:[#allocation2 + $0x1c0] sm:$0xff] }
  0xb9   : > { %v901_v29 = vadd.f32 %v869_v35, %v803_v40  ;;  %1327 = vst [vmem:[%s2174_s22 + $0x60] sm:$0xff] %v1295_v2  ;;  %v705_v0 = vadd.f32 %v673_v3, %v606_v32  ;;  %v772_v16 = vmul.f32 %v1994_v31, %v1031_v13  ;;  %v508_v39 = vadd.f32 %v1983_v23, %v476_v55 }
  0xba   : > { %v674_v48 = vmul.f32 %v1989_v27, %v1229_v10  ;;  %v1197_v50 = vadd.f32 %v1165_v34, %v1098_v63  ;;  %v1166_v51 = vmul.f32 %v2017_v57, %v1967_v17  ;;  %v870_v59 = vmul.f32 %v1998_v37, %v836_v15 }
  0xbb   : > { %v999_v61 = vadd.f32 %v967_v12, %v901_v29  ;;  %v804_v53 = vadd.f32 %v772_v16, %v705_v0  ;;  %v968_v52 = vmul.f32 %v2002_v42, %v1230_v44  ;;  %v607_v56 = vadd.f32 %v575_v46, %v508_v39  ;;  %v1233_v12 = vld [vmem:[#allocation2 + $0x2e0] sm:$0xff]  ;;  %v1035_v0 = vld [vmem:[#allocation2 + $0xa8] sm:$0xff] }
  0xbc   : > { %v477_v6 = vmul.f32 %v1977_v21, %v1031_v13  ;;  %v1296_v26 = vadd.f32 %v1264_v36, %v1197_v50  ;;  %v773_v10 = vmul.f32 %v1994_v31, %v1032_v9  ;;  %v576_v1 = vmul.f32 %v1986_v25, %v836_v15 }
  0xbd   : > { %v1099_v43 = vadd.f32 %v1067_v20, %v999_v61  ;;  %v902_v17 = vadd.f32 %v870_v59, %v804_v53  ;;  %v706_v22 = vadd.f32 %v674_v48, %v607_v56  ;;  %v675_v24 = vmul.f32 %v1989_v27, %v1230_v44 }
  0xbe   : > { %v509_v14 = vadd.f32 %v1983_v23, %v477_v6  ;;  %1328 = vst [vmem:[%s2174_s22 + $0x68] sm:$0xff] %v1296_v26  ;;  %v1265_v28 = vmul.f32 %v2019_v58, %v1231_v38  ;;  %v1068_v30 = vmul.f32 %v2006_v45, %v1033_v8  ;;  %v1167_v13 = vmul.f32 %v2017_v57, %v1133_v18 }
  0xbf   : > { %v1198_v19 = vadd.f32 %v1166_v51, %v1099_v43  ;;  %v1000_v54 = vadd.f32 %v968_v52, %v902_v17  ;;  %v805_v4 = vadd.f32 %v773_v10, %v706_v22  ;;  %v871_v60 = vmul.f32 %v1998_v37, %v837_v41  ;;  %v1135_v51 = vld [vmem:[#allocation2 + $0x1c8] sm:$0xff] }
  0xc0   : > { %v608_v35 = vadd.f32 %v576_v1, %v509_v14  ;;  %v969_v47 = vmul.f32 %v2002_v42, %v1231_v38  ;;  %v478_v44 = vmul.f32 %v1977_v21, %v1032_v9  ;;  %v577_v7 = vmul.f32 %v1986_v25, %v837_v41  ;;  %v1234_v41 = vld [vmem:[#allocation2 + $0x2e8] sm:$0xff] }
  0xc1   : > { %v1297_v11 = vadd.f32 %v1265_v28, %v1198_v19  ;;  %v1100_v33 = vadd.f32 %v1068_v30, %v1000_v54  ;;  %v903_v3 = vadd.f32 %v871_v60, %v805_v4  ;;  %v774_v36 = vmul.f32 %v1994_v31, %v1033_v8  ;;  %v1036_v19 = vld [vmem:[#allocation2 + $0xb0] sm:$0xff] }
  0xc2   : > { %v707_v34 = vadd.f32 %v675_v24, %v608_v35  ;;  %v1266_v40 = vmul.f32 %v2019_v58, %v1232_v49  ;;  %v1069_v2 = vmul.f32 %v2006_v45, %v1034_v5  ;;  %v510_v32 = vadd.f32 %v1983_v23, %v478_v44 }
  0xc3   : > { %1329 = vst [vmem:[%s2174_s22 + $0x70] sm:$0xff] %v1297_v11  ;;  %v676_v15 = vmul.f32 %v1989_v27, %v1231_v38  ;;  %v1199_v55 = vadd.f32 %v1167_v13, %v1100_v33  ;;  %v1001_v46 = vadd.f32 %v969_v47, %v903_v3  ;;  %v872_v63 = vmul.f32 %v1998_v37, %v1133_v18  ;;  %v1136_v13 = vld [vmem:[#allocation2 + $0x1d0] sm:$0xff] }
  0xc4   : > { %v806_v9 = vadd.f32 %v774_v36, %v707_v34  ;;  %v1168_v29 = vmul.f32 %v2017_v57, %v1134_v62  ;;  %v970_v20 = vmul.f32 %v2002_v42, %v1232_v49  ;;  %v609_v16 = vadd.f32 %v577_v7, %v510_v32  ;;  %v1037_v34 = vld [vmem:[#allocation2 + $0xb8] sm:$0xff] }
  0xc5   : > { %v479_v39 = vmul.f32 %v1977_v21, %v1033_v8  ;;  %v1298_v48 = vadd.f32 %v1266_v40, %v1199_v55  ;;  %v1101_v50 = vadd.f32 %v1069_v2, %v1001_v46  ;;  %v578_v59 = vmul.f32 %v1986_v25, %v1133_v18  ;;  %v1137_v55 = vld [vmem:[#allocation2 + $0x1d8] sm:$0xff] }
  0xc6   : > { %v904_v61 = vadd.f32 %v872_v63, %v806_v9  ;;  %v708_v38 = vadd.f32 %v676_v15, %v609_v16  ;;  %v775_v53 = vmul.f32 %v1994_v31, %v1034_v5  ;;  %v677_v56 = vmul.f32 %v1989_v27, %v1232_v49  ;;  %v1236_v46 = vld [vmem:[#allocation2 + $0x2f8] sm:$0xff] }
  0xc7   : > { %v511_v52 = vadd.f32 %v1983_v23, %v479_v39  ;;  %1330 = vst [vmem:[%s2174_s22 + $0x78] sm:$0xff] %v1298_v48  ;;  %v1200_v6 = vadd.f32 %v1168_v29, %v1101_v50  ;;  %v1267_v26 = vmul.f32 %v2019_v58, %v1233_v12  ;;  %v1070_v8 = vmul.f32 %v2006_v45, %v1035_v0 }
  0xc8   : > { %v1002_v43 = vadd.f32 %v970_v20, %v904_v61  ;;  %v1169_v10 = vmul.f32 %v2017_v57, %v1135_v51  ;;  %v807_v1 = vadd.f32 %v775_v53, %v708_v38  ;;  %v873_v18 = vmul.f32 %v1998_v37, %v1134_v62 }
  0xc9   : > { %v610_v17 = vadd.f32 %v578_v59, %v511_v52  ;;  %v1299_v22 = vadd.f32 %v1267_v26, %v1200_v6  ;;  %v971_v24 = vmul.f32 %v2002_v42, %v1233_v12  ;;  %v480_v28 = vmul.f32 %v1977_v21, %v1034_v5  ;;  %v1235_v5 = vld [vmem:[#allocation2 + $0x2f0] sm:$0xff]  ;;  %v1138_v6 = vld [vmem:[#allocation2 + $0x1e0] sm:$0xff] }
  0xca   : > { %v1102_v14 = vadd.f32 %v1070_v8, %v1002_v43  ;;  %v905_v30 = vadd.f32 %v873_v18, %v807_v1  ;;  %v776_v49 = vmul.f32 %v1994_v31, %v1035_v0  ;;  %v579_v4 = vmul.f32 %v1986_v25, %v1134_v62  ;;  %v1237_v26 = vld [vmem:[#allocation2 + $0x300] sm:$0xff] }
  0xcb   : > { %v709_v54 = vadd.f32 %v677_v56, %v610_v17  ;;  %1331 = vst [vmem:[%s2174_s22 + $0x80] sm:$0xff] %v1299_v22  ;;  %v1268_v35 = vmul.f32 %v2019_v58, %v1234_v41  ;;  %v512_v11 = vadd.f32 %v1983_v23, %v480_v28  ;;  %v678_v47 = vmul.f32 %v1989_v27, %v1233_v12  ;;  %v1038_v56 = vld [vmem:[#allocation2 + $0xc0] sm:$0xff] }
  0xcc   : > { %v1201_v60 = vadd.f32 %v1169_v10, %v1102_v14  ;;  %v1003_v44 = vadd.f32 %v971_v24, %v905_v30  ;;  %v1071_v7 = vmul.f32 %v2006_v45, %v1036_v19  ;;  %v874_v3 = vmul.f32 %v1998_v37, %v1135_v51 }
  0xcd   : > { %v808_v33 = vadd.f32 %v776_v49, %v709_v54  ;;  %v1170_v62 = vmul.f32 %v2017_v57, %v1136_v13  ;;  %v972_v40 = vmul.f32 %v2002_v42, %v1234_v41  ;;  %v611_v2 = vadd.f32 %v579_v4, %v512_v11  ;;  %v1039_v54 = vld [vmem:[#allocation2 + $0xc8] sm:$0xff] }
  0xce   : > { %v1300_v36 = vadd.f32 %v1268_v35, %v1201_v60  ;;  %v1103_v32 = vadd.f32 %v1071_v7, %v1003_v44  ;;  %v481_v9 = vmul.f32 %v1977_v21, %v1035_v0  ;;  %v580_v63 = vmul.f32 %v1986_v25, %v1135_v51  ;;  %v1238_v35 = vld [vmem:[#allocation2 + $0x308] sm:$0xff] }
  0xcf   : > { %v906_v15 = vadd.f32 %v874_v3, %v808_v33  ;;  %v1269_v29 = vmul.f32 %v2019_v58, %v1235_v5  ;;  %v1072_v12 = vmul.f32 %v2006_v45, %v1037_v34  ;;  %v710_v20 = vadd.f32 %v678_v47, %v611_v2  ;;  %v2365_v47 = vld [vmem:[#allocation6 + $0x1] ss:$0 sm:$0xff]  ;;  %v2380_v2 = vld [vmem:[#allocation6 + $0x2] ss:$0 sm:$0xff] }
  0xd0   : > { %1332 = vst [vmem:[%s2174_s22 + $0x88] sm:$0xff] %v1300_v36  ;;  %v777_v16 = vmul.f32 %v1994_v31, %v1036_v19  ;;  %v1202_v39 = vadd.f32 %v1170_v62, %v1103_v32  ;;  %v513_v50 = vadd.f32 %v1983_v23, %v481_v9  ;;  %v679_v61 = vmul.f32 %v1989_v27, %v1234_v41  ;;  %v1040_v62 = vld [vmem:[#allocation2 + $0xd0] sm:$0xff]  ;;  %v2384_v9 = vld [vmem:[#allocation6 + $0x5] ss:$0 sm:$0xff] }
  0xd1   : > { %v1004_v48 = vadd.f32 %v972_v40, %v906_v15  ;;  %v1171_v59 = vmul.f32 %v2017_v57, %v1137_v55  ;;  %v1270_v0 = vmul.f32 %v2019_v58, %v1236_v46  ;;  %v875_v38 = vmul.f32 %v1998_v37, %v1136_v13 }
  0xd2   : > { %v809_v51 = vadd.f32 %v777_v16, %v710_v20  ;;  %v1301_v53 = vadd.f32 %v1269_v29, %v1202_v39  ;;  %v612_v43 = vadd.f32 %v580_v63, %v513_v50  ;;  %v482_v8 = vmul.f32 %v1977_v21, %v1036_v19 }
  0xd3   : > { %v1104_v52 = vadd.f32 %v1072_v12, %v1004_v48  ;;  %v973_v1 = vmul.f32 %v2002_v42, %v1235_v5  ;;  %v778_v41 = vmul.f32 %v1994_v31, %v1037_v34  ;;  %v581_v18 = vmul.f32 %v1986_v25, %v1136_v13  ;;  %v1139_v13 = vld [vmem:[#allocation2 + $0x1e8] sm:$0xff]  ;;  %v1140_v12 = vld [vmem:[#allocation2 + $0x1f0] sm:$0xff] }
  0xd4   : > { %v907_v10 = vadd.f32 %v875_v38, %v809_v51  ;;  %1333 = vst [vmem:[%s2174_s22 + $0x90] sm:$0xff] %v1301_v53  ;;  %v711_v22 = vadd.f32 %v679_v61, %v612_v43  ;;  %v514_v14 = vadd.f32 %v1983_v23, %v482_v8  ;;  %v680_v24 = vmul.f32 %v1989_v27, %v1235_v5  ;;  %v2362_v27 = vld [vmem:[#allocation6] ss:$0 sm:$0xff]  ;;  %v2389_v61 = vld [vmem:[#allocation6 + $0x6] ss:$0 sm:$0xff]  ;;  %v1239_v8 = vld [vmem:[#allocation2 + $0x310] sm:$0xff] }
  0xd5   : > { %v1203_v17 = vadd.f32 %v1171_v59, %v1104_v52  ;;  %v1073_v30 = vmul.f32 %v2006_v45, %v1038_v56  ;;  %v1172_v21 = vmul.f32 %v2017_v57, %v1138_v6  ;;  %v1271_v19 = vmul.f32 %v2019_v58, %v1237_v26  ;;  %v2392_v59 = vld [vmem:[#allocation6 + $0x8] ss:$0 sm:$0xff] }
  0xd6   : > { %v1005_v28 = vadd.f32 %v973_v1, %v907_v10  ;;  %v810_v31 = vadd.f32 %v778_v41, %v711_v22  ;;  %v876_v25 = vmul.f32 %v1998_v37, %v1137_v55  ;;  %v613_v4 = vadd.f32 %v581_v18, %v514_v14  ;;  %v2370_v37 = vld [vmem:[#allocation6 + $0x4] ss:$0 sm:$0xff]  ;;  %v1041_v41 = vld [vmem:[#allocation2 + $0xd8] sm:$0xff] }
  0xd7   : > { %v1302_v49 = vadd.f32 %v1270_v0, %v1203_v17  ;;  %v974_v23 = vmul.f32 %v2002_v42, %v1236_v46  ;;  %v483_v11 = vmul.f32 %v2362_v27, %v1037_v34  ;;  %v582_v44 = vmul.f32 %v2365_v47, %v1137_v55  ;;  %v2377_v34 = vld [vmem:[%s2535_s2] ss:$0 sm:$0xff]  ;;  %v1141_v18 = vld [vmem:[#allocation2 + $0x1f8] sm:$0xff] }
  0xd8   : > { %v1105_v60 = vadd.f32 %v1073_v30, %v1005_v28  ;;  %v908_v7 = vadd.f32 %v876_v25, %v810_v31  ;;  %v1074_v5 = vmul.f32 %v2006_v45, %v1039_v54  ;;  %v712_v33 = vadd.f32 %v680_v24, %v613_v4  ;;  %v2408_v31 = vld [vmem:[#allocation6 + $0xa] ss:$0 sm:$0xff]  ;;  %v2412_v4 = vld [vmem:[#allocation6 + $0x9] ss:$0 sm:$0xff] }
  0xd9   : > { %1334 = vst [vmem:[%s2174_s22 + $0x98] sm:$0xff] %v1302_v49  ;;  %v779_v3 = vmul.f32 %v2370_v37, %v1038_v56  ;;  %v1173_v42 = vmul.f32 %v2017_v57, %v1139_v13  ;;  %v515_v40 = vadd.f32 %v2377_v34, %v483_v11  ;;  %v681_v45 = vmul.f32 %v2380_v2, %v1236_v46 }
  0xda   : > { %v1204_v36 = vadd.f32 %v1172_v21, %v1105_v60  ;;  %v1006_v32 = vadd.f32 %v974_v23, %v908_v7  ;;  %v1272_v15 = vmul.f32 %v2019_v58, %v1238_v35  ;;  %v877_v63 = vmul.f32 %v2384_v9, %v1138_v6  ;;  %v1240_v23 = vld [vmem:[#allocation2 + $0x318] sm:$0xff]  ;;  %v1042_v7 = vld [vmem:[#allocation2 + $0xe0] sm:$0xff] }
  0xdb   : > { %v811_v55 = vadd.f32 %v779_v3, %v712_v33  ;;  %v614_v20 = vadd.f32 %v582_v44, %v515_v40  ;;  %v484_v16 = vmul.f32 %v2362_v27, %v1038_v56  ;;  %v583_v39 = vmul.f32 %v2365_v47, %v1138_v6 }
  0xdc   : > { %v1303_v29 = vadd.f32 %v1271_v19, %v1204_v36  ;;  %v1106_v48 = vadd.f32 %v1074_v5, %v1006_v32  ;;  %v975_v46 = vmul.f32 %v2389_v61, %v1237_v26  ;;  %v1075_v58 = vmul.f32 %v2392_v59, %v1040_v62 }
  0xdd   : > { %v909_v50 = vadd.f32 %v877_v63, %v811_v55  ;;  %v713_v0 = vadd.f32 %v681_v45, %v614_v20  ;;  %v780_v51 = vmul.f32 %v2370_v37, %v1039_v54  ;;  %v516_v38 = vadd.f32 %v2377_v34, %v484_v16  ;;  %v1142_v45 = vld [vmem:[#allocation2 + $0x200] sm:$0xff] }
  0xde   : > { %1335 = vst [vmem:[%s2174_s22 + $0xa0] sm:$0xff] %v1303_v29  ;;  %v682_v53 = vmul.f32 %v2380_v2, %v1237_v26  ;;  %v1205_v52 = vadd.f32 %v1173_v42, %v1106_v48  ;;  %v1174_v6 = vmul.f32 %v2017_v57, %v1140_v12  ;;  %v878_v43 = vmul.f32 %v2384_v9, %v1139_v13 }
  0xdf   : > { %v1007_v56 = vadd.f32 %v975_v46, %v909_v50  ;;  %v812_v10 = vadd.f32 %v780_v51, %v713_v0  ;;  %v976_v1 = vmul.f32 %v2389_v61, %v1238_v35  ;;  %v615_v17 = vadd.f32 %v583_v39, %v516_v38  ;;  %v1241_v50 = vld [vmem:[#allocation2 + $0x320] sm:$0xff] }
  0xe0   : > { %v485_v22 = vmul.f32 %v2362_v27, %v1039_v54  ;;  %v1304_v14 = vadd.f32 %v1272_v15, %v1205_v52  ;;  %v781_v26 = vmul.f32 %v2370_v37, %v1040_v62  ;;  %v584_v28 = vmul.f32 %v2365_v47, %v1139_v13 }
  0xe1   : > { %v1107_v24 = vadd.f32 %v1075_v58, %v1007_v56  ;;  %v910_v30 = vadd.f32 %v878_v43, %v812_v10  ;;  %v714_v57 = vadd.f32 %v682_v53, %v615_v17  ;;  %v683_v19 = vmul.f32 %v2380_v2, %v1238_v35  ;;  %v1043_v58 = vld [vmem:[#allocation2 + $0xe8] sm:$0xff] }
  0xe2   : > { %v517_v21 = vadd.f32 %v2377_v34, %v485_v22  ;;  %1336 = vst [vmem:[%s2174_s22 + $0xa8] sm:$0xff] %v1304_v14  ;;  %v1273_v25 = vmul.f32 %v2408_v31, %v1239_v8  ;;  %v1076_v54 = vmul.f32 %v2392_v59, %v1041_v41  ;;  %v1175_v60 = vmul.f32 %v2412_v4, %v1141_v18  ;;  %v1143_v56 = vld [vmem:[#allocation2 + $0x208] sm:$0xff] }
  0xe3   : > { %v1206_v49 = vadd.f32 %v1174_v6, %v1107_v24  ;;  %v1008_v13 = vadd.f32 %v976_v1, %v910_v30  ;;  %v813_v11 = vadd.f32 %v781_v26, %v714_v57  ;;  %v879_v44 = vmul.f32 %v2384_v9, %v1140_v12  ;;  %v1242_v26 = vld [vmem:[#allocation2 + $0x328] sm:$0xff] }
  0xe4   : > { %v616_v35 = vadd.f32 %v584_v28, %v517_v21  ;;  %v977_v33 = vmul.f32 %v2389_v61, %v1239_v8  ;;  %v486_v3 = vmul.f32 %v2362_v27, %v1040_v62  ;;  %v585_v36 = vmul.f32 %v2365_v47, %v1140_v12 }
  0xe5   : > { %v1305_v5 = vadd.f32 %v1273_v25, %v1206_v49  ;;  %v1108_v42 = vadd.f32 %v1076_v54, %v1008_v13  ;;  %v911_v40 = vadd.f32 %v879_v44, %v813_v11  ;;  %v782_v15 = vmul.f32 %v2370_v37, %v1041_v41  ;;  %v1044_v49 = vld [vmem:[#allocation2 + $0xf0] sm:$0xff] }
  0xe6   : > { %v715_v32 = vadd.f32 %v683_v19, %v616_v35  ;;  %v1274_v55 = vmul.f32 %v2408_v31, %v1240_v23  ;;  %v1077_v63 = vmul.f32 %v2392_v59, %v1042_v7  ;;  %v518_v29 = vadd.f32 %v2377_v34, %v486_v3 }
  0xe7   : > { %1337 = vst [vmem:[%s2174_s22 + $0xb0] sm:$0xff] %v1305_v5  ;;  %v684_v20 = vmul.f32 %v2380_v2, %v1239_v8  ;;  %v1207_v16 = vadd.f32 %v1175_v60, %v1108_v42  ;;  %v1009_v39 = vadd.f32 %v977_v33, %v911_v40  ;;  %v880_v12 = vmul.f32 %v2384_v9, %v1141_v18  ;;  %v1144_v60 = vld [vmem:[#allocation2 + $0x210] sm:$0xff] }
  0xe8   : > { %v814_v62 = vadd.f32 %v782_v15, %v715_v32  ;;  %v1176_v48 = vmul.f32 %v2412_v4, %v1142_v45  ;;  %v978_v46 = vmul.f32 %v2389_v61, %v1240_v23  ;;  %v617_v0 = vadd.f32 %v585_v36, %v518_v29  ;;  %v1045_v32 = vld [vmem:[#allocation2 + $0xf8] sm:$0xff] }
  0xe9   : > { %v487_v51 = vmul.f32 %v2362_v27, %v1041_v41  ;;  %v1306_v38 = vadd.f32 %v1274_v55, %v1207_v16  ;;  %v1109_v53 = vadd.f32 %v1077_v63, %v1009_v39  ;;  %v586_v6 = vmul.f32 %v2365_v47, %v1141_v18  ;;  %v1145_v16 = vld [vmem:[#allocation2 + $0x218] sm:$0xff] }
  0xea   : > { %v912_v52 = vadd.f32 %v880_v12, %v814_v62  ;;  %v716_v43 = vadd.f32 %v684_v20, %v617_v0  ;;  %v783_v8 = vmul.f32 %v2370_v37, %v1042_v7  ;;  %v685_v1 = vmul.f32 %v2380_v2, %v1240_v23  ;;  %v1244_v39 = vld [vmem:[#allocation2 + $0x338] sm:$0xff] }
  0xeb   : > { %v519_v10 = vadd.f32 %v2377_v34, %v487_v51  ;;  %1338 = vst [vmem:[%s2174_s22 + $0xb8] sm:$0xff] %v1306_v38  ;;  %v1208_v17 = vadd.f32 %v1176_v48, %v1109_v53  ;;  %v1275_v22 = vmul.f32 %v2408_v31, %v1241_v50  ;;  %v1078_v41 = vmul.f32 %v2392_v59, %v1043_v58 }
  0xec   : > { %v1010_v14 = vadd.f32 %v978_v46, %v912_v52  ;;  %v1177_v24 = vmul.f32 %v2412_v4, %v1143_v56  ;;  %v815_v28 = vadd.f32 %v783_v8, %v716_v43  ;;  %v881_v18 = vmul.f32 %v2384_v9, %v1142_v45 }
  0xed   : > { %v618_v30 = vadd.f32 %v586_v6, %v519_v10  ;;  %v1307_v57 = vadd.f32 %v1275_v22, %v1208_v17  ;;  %v979_v19 = vmul.f32 %v2389_v61, %v1241_v50  ;;  %v488_v25 = vmul.f32 %v2362_v27, %v1042_v7  ;;  %v1243_v7 = vld [vmem:[#allocation2 + $0x330] sm:$0xff] }
  0xee   : > { %v1110_v21 = vadd.f32 %v1078_v41, %v1010_v14  ;;  %v913_v54 = vadd.f32 %v881_v18, %v815_v28  ;;  %v784_v23 = vmul.f32 %v2370_v37, %v1043_v58  ;;  %v587_v11 = vmul.f32 %v2365_v47, %v1142_v45  ;;  %v1146_v18 = vld [vmem:[#allocation2 + $0x220] sm:$0xff] }
  0xef   : > { %v717_v13 = vadd.f32 %v685_v1, %v618_v30  ;;  %1339 = vst [vmem:[%s2174_s22 + $0xc0] sm:$0xff] %v1307_v57  ;;  %v1276_v35 = vmul.f32 %v2408_v31, %v1242_v26  ;;  %v520_v5 = vadd.f32 %v2377_v34, %v488_v25  ;;  %v686_v33 = vmul.f32 %v2380_v2, %v1241_v50  ;;  %v1046_v1 = vld [vmem:[#allocation2 + $0x100] sm:$0xff] }
  0xf0   : > { %v1209_v44 = vadd.f32 %v1177_v24, %v1110_v21  ;;  %v1011_v3 = vadd.f32 %v979_v19, %v913_v54  ;;  %v1079_v36 = vmul.f32 %v2392_v59, %v1044_v49  ;;  %v882_v40 = vmul.f32 %v2384_v9, %v1143_v56 }
  0xf1   : > { %v816_v42 = vadd.f32 %v784_v23, %v717_v13  ;;  %v1178_v45 = vmul.f32 %v2412_v4, %v1144_v60  ;;  %v980_v55 = vmul.f32 %v2389_v61, %v1242_v26  ;;  %v619_v63 = vadd.f32 %v587_v11, %v520_v5  ;;  %v1245_v13 = vld [vmem:[#allocation2 + $0x340] sm:$0xff]  ;;  %v1047_v5 = vld [vmem:[#allocation2 + $0x108] sm:$0xff] }
  0xf2   : > { %v1308_v15 = vadd.f32 %v1276_v35, %v1209_v44  ;;  %v1111_v29 = vadd.f32 %v1079_v36, %v1011_v3  ;;  %v489_v62 = vmul.f32 %v2362_v27, %v1043_v58  ;;  %v588_v12 = vmul.f32 %v2365_v47, %v1143_v56 }
  0xf3   : > { %v914_v20 = vadd.f32 %v882_v40, %v816_v42  ;;  %v1277_v48 = vmul.f32 %v2408_v31, %v1243_v7  ;;  %v1080_v50 = vmul.f32 %v2392_v59, %v1045_v32  ;;  %v718_v46 = vadd.f32 %v686_v33, %v619_v63 }
  0xf4   : > { %1340 = vst [vmem:[%s2174_s22 + $0xc8] sm:$0xff] %v1308_v15  ;;  %v785_v0 = vmul.f32 %v2370_v37, %v1044_v49  ;;  %v1210_v51 = vadd.f32 %v1178_v45, %v1111_v29  ;;  %v521_v53 = vadd.f32 %v2377_v34, %v489_v62  ;;  %v687_v52 = vmul.f32 %v2380_v2, %v1242_v26  ;;  %v1246_v62 = vld [vmem:[#allocation2 + $0x348] sm:$0xff] }
  0xf5   : > { %v1012_v38 = vadd.f32 %v980_v55, %v914_v20  ;;  %v1179_v6 = vmul.f32 %v2412_v4, %v1145_v16  ;;  %v1278_v58 = vmul.f32 %v2408_v31, %v1244_v39  ;;  %v883_v43 = vmul.f32 %v2384_v9, %v1144_v60  ;;  %v1147_v55 = vld [vmem:[#allocation2 + $0x228] sm:$0xff] }
  0xf6   : > { %v817_v56 = vadd.f32 %v785_v0, %v718_v46  ;;  %v1309_v8 = vadd.f32 %v1277_v48, %v1210_v51  ;;  %v620_v17 = vadd.f32 %v588_v12, %v521_v53  ;;  %v490_v22 = vmul.f32 %v2362_v27, %v1044_v49  ;;  %v1593_v51 = vld [vmem:[#allocation2] sm:$0xff] }
  0xf7   : > { %v1112_v10 = vadd.f32 %v1080_v50, %v1012_v38  ;;  %v981_v41 = vmul.f32 %v2389_v61, %v1243_v7  ;;  %v786_v24 = vmul.f32 %v2370_v37, %v1045_v32  ;;  %v589_v26 = vmul.f32 %v2365_v47, %v1144_v60 }
  0xf8   : > { %v915_v14 = vadd.f32 %v883_v43, %v817_v56  ;;  %1341 = vst [vmem:[%s2174_s22 + $0xd0] sm:$0xff] %v1309_v8  ;;  %v719_v30 = vadd.f32 %v687_v52, %v620_v17  ;;  %v522_v57 = vadd.f32 %v2377_v34, %v490_v22  ;;  %v688_v21 = vmul.f32 %v2380_v2, %v1243_v7 }
  0xf9   : > { %v1211_v28 = vadd.f32 %v1179_v6, %v1112_v10  ;;  %v1081_v25 = vmul.f32 %v2392_v59, %v1046_v1  ;;  %v884_v49 = vmul.f32 %v2384_v9, %v1145_v16  ;;  %v787_v60 = vmul.f32 %v2370_v37, %v1046_v1 }
  0xfa   : > { %v1013_v19 = vadd.f32 %v981_v41, %v915_v14  ;;  %v818_v23 = vadd.f32 %v786_v24, %v719_v30  ;;  %v621_v11 = vadd.f32 %v589_v26, %v522_v57  ;;  %v1180_v35 = vmul.f32 %v2412_v4, %v1146_v18 }
  0xfb   : > { %v1310_v54 = vadd.f32 %v1278_v58, %v1211_v28  ;;  %v491_v33 = vmul.f32 %v2362_v27, %v1045_v32  ;;  %v590_v3 = vmul.f32 %v2365_v47, %v1145_v16  ;;  %v982_v7 = vmul.f32 %v2389_v61, %v1244_v39 }
  0xfc   : > { %v1113_v44 = vadd.f32 %v1081_v25, %v1013_v19  ;;  %v916_v36 = vadd.f32 %v884_v49, %v818_v23  ;;  %v720_v42 = vadd.f32 %v688_v21, %v621_v11  ;;  %v885_v40 = vmul.f32 %v2384_v9, %v1146_v18 }
  0xfd   : > { %1342 = vst [vmem:[%s2174_s22 + $0xd8] sm:$0xff] %v1310_v54  ;;  %v1279_v45 = vmul.f32 %v2408_v31, %v1245_v13  ;;  %v523_v63 = vadd.f32 %v2377_v34, %v491_v33  ;;  %v689_v29 = vmul.f32 %v2380_v2, %v1244_v39  ;;  %v1082_v27 = vmul.f32 %v2392_v59, %v1047_v5 }
  0xfe   : > { %v1212_v15 = vadd.f32 %v1180_v35, %v1113_v44  ;;  %v1014_v20 = vadd.f32 %v982_v7, %v916_v36  ;;  %v819_v47 = vadd.f32 %v787_v60, %v720_v42  ;;  %v983_v32 = vmul.f32 %v2389_v61, %v1245_v13 }
  0xff   : > { %v622_v12 = vadd.f32 %v590_v3, %v523_v63  ;;  %v788_v48 = vmul.f32 %v2370_v37, %v1047_v5  ;;  %v1181_v46 = vmul.f32 %v2412_v4, %v1147_v55  ;;  %v1083_v34 = vmul.f32 %v1593_v51, %v2392_v59 }
 0x100   : > { %v1311_v16 = vadd.f32 %v1279_v45, %v1212_v15  ;;  %v1114_v50 = vadd.f32 %v1082_v27, %v1014_v20  ;;  %v917_v0 = vadd.f32 %v885_v40, %v819_v47  ;;  %v886_v39 = vmul.f32 %v2384_v9, %v1147_v55 }
 0x101   : > { %v721_v2 = vadd.f32 %v689_v29, %v622_v12  ;;  %v1280_v53 = vmul.f32 %v2408_v31, %v1246_v62  ;;  %v1182_v6 = vmul.f32 %v1593_v51, %v2412_v4  ;;  %v984_v58 = vmul.f32 %v2389_v61, %v1246_v62 }
 0x102   : > { %1343 = vst [vmem:[%s2174_s22 + $0xe0] sm:$0xff] %v1311_v16  ;;  %v1213_v38 = vadd.f32 %v1181_v46, %v1114_v50  ;;  %v1015_v52 = vadd.f32 %v983_v32, %v917_v0  ;;  %v1281_v59 = vmul.f32 %v1593_v51, %v2408_v31 }
 0x103   : > { %v820_v37 = vadd.f32 %v788_v48, %v721_v2 }
 0x104   : > { %v1312_v56 = vadd.f32 %v1280_v53, %v1213_v38  ;;  %v1115_v43 = vadd.f32 %v1083_v34, %v1015_v52 }
 0x105   : > { %v918_v8 = vadd.f32 %v886_v39, %v820_v37 }
 0x106   : > { %1344 = vst [vmem:[%s2174_s22 + $0xe8] sm:$0xff] %v1312_v56  ;;  %v1214_v9 = vadd.f32 %v1182_v6, %v1115_v43 }
 0x107   : > { %v1016_v10 = vadd.f32 %v984_v58, %v918_v8 }
 0x108   : > { %v1313_v4 = vadd.f32 %v1281_v59, %v1214_v9 }
 0x109   : > { %v1116_v1 = vadd.f32 %v1083_v34, %v1016_v10 }
 0x10a   : > { %1345 = vst [vmem:[%s2174_s22 + $0xf0] sm:$0xff] %v1313_v4 }
 0x10b   : > { %v1215_v61 = vadd.f32 %v1182_v6, %v1116_v1 }
 0x10d   : > { %v1314_v17 = vadd.f32 %v1281_v59, %v1215_v61 }
 0x10f   : > { %1346 = vst [vmem:[%s2174_s22 + $0xf8] sm:$0xff] %v1314_v17 }
 0x110   : > { %1681 = shalt.err (!%p1678_p0)
}
 0x111   : > { %s1748_s6 = smov 128   ;;  %s1749_s20 = smov 8  }
 0x112   : > { %1499 = dma.vmem_to_hbm [thread:$0]  (%p1849_p5), %s1362_s28, 4096, %s1364_s29, %s1348_s15, %s1748_s6, %s1748_s6, %s1749_s20  }
 0x113 PF: > { %s1378_s22 = sand.u32 1, %s1720_s12   ;;  %p1510_p3 = pnand %p1478_p11, %p1819_p6 }
 0x114   : > { %s1379_s27 = scalar_lea.sflag [#allocation5], %s1378_s22 }
 0x115   : > { %p1511_p7 = pneg %p1510_p3 }
 0x117   : > { %1715 = dma.done.wait (%p1511_p7), %s1379_s27, 4096  }
 0x118   : > { %1717 = vsyncadd (%p1511_p7), %s1379_s27, 4294963200  ;;  %s20_s17 = sadd.s32 1, %s1740_s17   ;;  %s2546_s12 = smov %s1724_s13 }
 0x119   : > { %p17_p9 = scmp.ge.s32.totalorder %s20_s17, 4   ;;  %s2547_s13 = smov %s1728_s14 }
 0x11a   : > { %s2548_s14 = smov %s1858_s18  ;;  %s2549_s15 = smov %s1736_s16 }
 0x11b   : > { %s2550_s16 = smov %s2552_s5  ;;  %19 = sbr.rel (!%p17_p9) target bundleno = 9 (0x9), region = 96 }
 0x120   :  { %1385 = vsyncpa [#allocation4], 1 }
 0x121   :  { %1387 = vsyncpa [#allocation4 + $0x1], 1 }
 0x122   :  { %1388 = vsyncpa [#allocation7], 1 }
 0x123   :  { %1389 = vsyncpa [#allocation5], 1 }
 0x124   :  { %1391 = vsyncpa [#allocation5 + $0x1], 1 }

</bundles_post_ra>
